<compile_context>
chip_gen: v7x
topology: tpu7x:2x2x1
jax: 0.10.0
libtpu: 0.0.40
codegen_flags: <defaults>
</compile_context>

<pallas_src>
import numpy as np
import jax
import jax.numpy as jnp
from jax import lax
from jax.experimental import pallas as pl
from jax.experimental.pallas import tpu as pltpu

LANE = 128  # TPU lane width; halo blocks are one lane-tile wide


def _pick_t_tile(T):
    # largest multiple-of-128 divisor of T, capped at 1024 (guide: >=512 tiles ~85% HBM roofline)
    for cand in range(1024, 0, -LANE):
        if cand <= T and T % cand == 0:
            return cand
    raise ValueError(f"T={T} must be a multiple of {LANE}")


def _vmem_limit_bytes():
    try:
        cap = pltpu.get_tpu_info().vmem_capacity_bytes
        return max(32 * 1024 * 1024, int(cap * 0.9))
    except Exception:
        return 64 * 1024 * 1024


def make_generator_block(dilations, channels, kernel_size, upsample_factor=2,
                         compute_dtype=jnp.bfloat16, out_dtype=jnp.float32,
                         t_tile=None, interleave_output=True):
    U = upsample_factor
    K_up = U * 2
    pad_up = U // 2
    n_layers = len(dilations)
    C = channels
    n_res = U if U > 1 else 1

    # Per-layer halo: output col q reads input cols q + (j*d - P), P = k*d//2 (PyTorch padding,
    # truncated to the first T outputs -- exactly what GeneratorBlock.forward does).
    lefts = [kernel_size * d // 2 for d in dilations]
    rights = [(kernel_size - 1) * d - P for d, P in zip(dilations, lefts)]

    # ConvTranspose1d(stride=U, k=2U, pad=U//2) residue decomposition:
    #   residue r, col q:  y_r[q] += W_j @ x[q - s],  s = (j - pad - r)//U  when (j - pad - r)%U==0
    up_shifts = {}
    up_left = up_right = 0
    if U > 1:
        assert U % 2 == 0, "even upsample_factor assumed (PyTorch default U=2)"
        for r in range(U):
            ss = [((j - pad_up - r) // U, j) for j in range(K_up)
                  if (j - pad_up - r) % U == 0]
            up_shifts[r] = ss
            up_left = max(up_left, max(s for s, _ in ss))
            up_right = max(up_right, max(-s for s, _ in ss))
        up_left = max(up_left, 0)
        up_right = max(up_right, 0)

    HALO_L = sum(lefts) + up_left          # accumulated left receptive field of the block
    HALO_R = sum(rights) + up_right        # accumulated right receptive field of the block
    assert HALO_L + HALO_R <= LANE, "halo exceeds one 128-lane tile; widen the halo blocks"

    VMEM_LIMIT = _vmem_limit_bytes()

    def pack_weights(conv_w, up_w):
        # conv_w: (n_layers, C_out, C_in, k) -- PyTorch Conv1d layout (bias=False in the module)
        # up_w:   (C_in, C_out, 2U)          -- PyTorch ConvTranspose1d layout (bias=False)
        # One-time tap-stacking + cast to the MXU compute dtype.
        wc = jnp.transpose(conv_w, (0, 3, 1, 2)).reshape(n_layers, kernel_size * C, C)
        wu = jnp.transpose(up_w, (2, 1, 0)).reshape(K_up * C, C)
        return wc.astype(compute_dtype), wu.astype(compute_dtype)

    def forward(x, wc_packed, wu_packed):
        B, Cx, T = x.shape
        assert Cx == C
        assert T % LANE == 0, "time dim must be a multiple of 128"
        T_t = t_tile if t_tile is not None else _pick_t_tile(T)
        assert T_t % LANE == 0 and T_t >= LANE and T_t <= T and T % T_t == 0
        n_t = T // T_t
        nb = T_t // LANE
        HL = HALO_L                       # left halo actually consumed from the 128-lane block
        HR = LANE - HL                    # right halo -> window width stays lane-aligned
        assert HR >= HALO_R
        W = T_t + LANE                    # halo'd window width (multiple of 128)

        def kernel(xl_ref, xc_ref, xr_ref, wc_ref, wu_ref, out_ref, win_ref):
            t = pl.program_id(1)

            # ---- assemble halo'd window [left halo | tile | right halo] into VMEM scratch ----
            if HL > 0:
                win_ref[:, :HL] = xl_ref[...][:, LANE - HL:].astype(jnp.float32)
            win_ref[:, HL:HL + T_t] = xc_ref[...].astype(jnp.float32)
            if HR > 0:
                win_ref[:, HL + T_t:] = xr_ref[...][:, :HR].astype(jnp.float32)

            # Columns whose global position is outside [0, T) must act like PyTorch's implicit
            # zero padding at every layer.  (1, W) iota broadcasts over sublanes; the mask is a
            # no-op on interior tiles.
            col = lax.broadcasted_iota(jnp.int32, (1, W), 1) + (t * T_t - HL)
            valid = jnp.logical_and(col >= 0, col < T)

            x32 = jnp.where(valid, win_ref[...], 0.0)

            def shift(a, off):
                # b[:, q] = a[:, q + off]; window-edge wraparound only touches columns outside
                # the needed cone (halo budget == accumulated receptive field), so no mask.
                return a if off == 0 else pltpu.roll(a, (-off) % W, axis=1)

            def leaky(v):
                return jnp.maximum(v, 0.2 * v)

            # ---- increasingly dilated residual conv stack: x = leaky(x + conv_d(x)[..., :T]) ----
            for li, d in enumerate(dilations):
                P = kernel_size * d // 2
                taps = jnp.dot(wc_ref[li], x32.astype(compute_dtype),
                               preferred_element_type=jnp.float32)      # (k*C, W), one MXU matmul
                acc = x32
                for j in range(kernel_size):
                    acc = acc + shift(taps[j * C:(j + 1) * C, :], j * d - P)
                x32 = jnp.where(valid, leaky(acc), 0.0)

            # ---- ConvTranspose1d upsampler, decomposed by output residue r = o % U ----
            if U > 1:
                taps = jnp.dot(wu_ref[...], x32.astype(compute_dtype),
                               preferred_element_type=jnp.float32)      # (2U*C, W), one MXU matmul
                for r in range(U):
                    y = None
                    for s, j in up_shifts[r]:
                        c = shift(taps[j * C:(j + 1) * C, :], -s)
                        y = c if y is None else y + c
                    out_ref[r] = leaky(y[:, HL:HL + T_t]).astype(out_ref.dtype)
            else:
                out_ref[0] = x32[:, HL:HL + T_t].astype(out_ref.dtype)

        flops = 2 * B * n_t * C * C * W * (n_layers * kernel_size + (K_up if U > 1 else 0))
        bytes_accessed = int(x.size * x.dtype.itemsize
                             + B * n_res * C * T * jnp.dtype(out_dtype).itemsize
                             + wc_packed.size * wc_packed.dtype.itemsize
                             + wu_packed.size * wu_packed.dtype.itemsize)

        out = pl.pallas_call(
            kernel,
            out_shape=jax.ShapeDtypeStruct((B, n_res, C, T), out_dtype),
            grid_spec=pltpu.PrefetchScalarGridSpec(
                num_scalar_prefetch=0,
                grid=(B, n_t),
                in_specs=[
                    # three views of the same input: left halo / current tile / right halo
                    pl.BlockSpec((pl.Squeezed(), C, LANE),
                                 lambda b, t: (b, 0, jnp.maximum(t * nb - 1, 0))),
                    pl.BlockSpec((pl.Squeezed(), C, T_t), lambda b, t: (b, 0, t)),
                    pl.BlockSpec((pl.Squeezed(), C, LANE),
                                 lambda b, t: (b, 0, jnp.minimum(t * nb + nb, T // LANE - 1))),
                    # packed weights: VMEM-resident for the whole call (no per-step double buffer)
                    pl.BlockSpec(memory_space=pltpu.MemorySpace.VMEM),
                    pl.BlockSpec(memory_space=pltpu.MemorySpace.VMEM),
                ],
                out_specs=pl.BlockSpec((pl.Squeezed(), n_res, C, T_t),
                                       lambda b, t: (b, 0, 0, t)),
                scratch_shapes=[pltpu.VMEM((C, W), jnp.float32)],
            ),
            compiler_params=pltpu.CompilerParams(
                dimension_semantics=("parallel", "parallel"),
                vmem_limit_bytes=VMEM_LIMIT),
            cost_estimate=pl.CostEstimate(flops=flops, transcendentals=0,
                                          bytes_accessed=bytes_accessed),
        )(x, x, x, wc_packed, wu_packed)

        if U > 1:
            if interleave_output:
                # TODO(synk): consumers that accept the (B, U, C, T) residue layout (or bf16
                # out_dtype) skip this extra HBM round trip of the output (largest waste on v5e).
                return jnp.transpose(out, (0, 2, 3, 1)).reshape(B, C, U * T)
            return out
        return out[:, 0]

    return pack_weights, forward


# ---------------- pure numpy reference (PyTorch semantics, float64) ----------------
def _leaky_np(v):
    return np.where(v > 0, v, 0.2 * v)


def ref_forward(x, conv_w, up_w, dilations, ksize, U):
    x = np.asarray(x, np.float64)
    conv_w = np.asarray(conv_w, np.float64)
    up_w = np.asarray(up_w, np.float64)
    B, C, T = x.shape
    out = x.copy()
    for li, d in enumerate(dilations):
        P = ksize * d // 2
        w = conv_w[li]                      # (C_out, C_in, k)
        t = np.zeros((B, C, T))
        for j in range(ksize):
            for i in range(T):
                src = i + j * d - P
                if 0 <= src < T:
                    t[:, :, i] += out[:, :, src] @ w[:, :, j].T
        out = _leaky_np(out + t)
    if U > 1:
        K = 2 * U
        pad = U // 2
        L_out = (T - 1) * U - 2 * pad + K
        y = np.zeros((B, C, L_out))
        for j in range(K):
            for i in range(T):
                o = i * U + j - pad
                if 0 <= o < L_out:
                    y[:, :, o] += out[:, :, i] @ up_w[:, :, j]
        out = _leaky_np(y)
    return out


if __name__ == "__main__":
    key = jax.random.PRNGKey(0)
    kx, kw, ku = jax.random.split(key, 3)

    B, C, T = 2, 8, 1024
    x = jax.random.normal(kx, (B, C, T), jnp.float32)

    configs = [
        # (dilations, ksize, upsample, compute_dtype, t_tile, rtol, atol)
        ((1, 2, 4), 3, 2, jnp.float32,  256,  3e-4, 3e-4),   # exact math, 4 time-tiles + halos
        ((1, 2, 4), 3, 2, jnp.bfloat16, 256,  1e-1, 2e-1),   # production path: bf16 MXU, f32 accum
        ((1, 3, 9), 3, 1, jnp.float32,  512,  3e-4, 3e-4),   # no-upsample branch, 2 time-tiles
        ((1, 1),    3, 1, jnp.float32,  None, 3e-4, 3e-4),   # single-tile path (auto t_tile)
    ]

    for dil, ks, U, cdt, tt, rtol, atol in configs:
        conv_w = jax.random.normal(kw, (len(dil), C, C, ks), jnp.float32) * 0.2
        up_w = jax.random.normal(ku, (C, C, 2 * U), jnp.float32) * 0.2

        pack, fwd = make_generator_block(dil, C, ks, U, compute_dtype=cdt, t_tile=tt)
        wc, wu = pack(conv_w, up_w)                 # one-time weight packing / cast
        y = jax.block_until_ready(jax.jit(fwd)(x, wc, wu))

        y_ref = ref_forward(np.array(x), np.array(conv_w), np.array(up_w), dil, ks, U)
        exp_T = U * T if U > 1 else T
        assert y.shape == (B, C, exp_T), (y.shape, (B, C, exp_T))
        np.testing.assert_allclose(np.array(y), y_ref, rtol=rtol, atol=atol)

    print("KERNEL_OK")
</pallas_src>

<mosaic_0001>
module attributes {stable_mosaic.version = 11 : i64} {
  func.func @kernel(%arg0: i32, %arg1: i32, %arg2: memref<1x8x128xf32, #tpu.memory_space<vmem>>, %arg3: memref<1x8x256xf32, #tpu.memory_space<vmem>>, %arg4: memref<1x8x128xf32, #tpu.memory_space<vmem>>, %arg5: memref<3x24x8xf32, #tpu.memory_space<vmem>>, %arg6: memref<32x8xf32, #tpu.memory_space<vmem>>, %arg7: memref<1x2x8x256xf32, #tpu.memory_space<vmem>>, %arg8: memref<8x384xf32, #tpu.memory_space<vmem>>) attributes {dimension_semantics = [#tpu.dimension_semantics<parallel>, #tpu.dimension_semantics<parallel>], iteration_bounds = array<i64: 2, 4>, scalar_prefetch = 0 : i64, scratch_operands = 1 : i64, tpu.core_type = #tpu.core_type<tc>, window_params = [{transform_indices = @transform_0, window_bounds = array<i64: 1, 8, 128>}, {transform_indices = @transform_1, window_bounds = array<i64: 1, 8, 256>}, {transform_indices = @transform_2, window_bounds = array<i64: 1, 8, 128>}, {pipeline_mode = #tpu.pipeline_mode<synchronous>, transform_indices = @transform_3, window_bounds = array<i64: 3, 24, 8>}, {pipeline_mode = #tpu.pipeline_mode<synchronous>, transform_indices = @transform_4, window_bounds = array<i64: 32, 8>}, {transform_indices = @transform_5, window_bounds = array<i64: 1, 2, 8, 256>}]} {
    %c0 = arith.constant 0 : index
    %c0_0 = arith.constant 0 : index
    %c0_1 = arith.constant 0 : index
    %0 = vector.load %arg2[%c0, %c0_0, %c0_1] : memref<1x8x128xf32, #tpu.memory_space<vmem>>, vector<1x8x128xf32>
    %1 = vector.shape_cast %0 : vector<1x8x128xf32> to vector<8x128xf32>
    %2 = vector.extract_strided_slice %1 {offsets = [0, 117], sizes = [8, 11], strides = [1, 1]} : vector<8x128xf32> to vector<8x11xf32>
    %c0_2 = arith.constant 0 : index
    %c0_3 = arith.constant 0 : index
    %3 = vector.load %arg8[%c0_2, %c0_3] : memref<8x384xf32, #tpu.memory_space<vmem>>, vector<8x11xf32>
    tpu.vector_store %arg8[%c0_2, %c0_3], %2 {strides = array<i32>} : memref<8x384xf32, #tpu.memory_space<vmem>>, vector<8x11xf32>,
    %c0_4 = arith.constant 0 : index
    %c0_5 = arith.constant 0 : index
    %c0_6 = arith.constant 0 : index
    %4 = vector.load %arg3[%c0_4, %c0_5, %c0_6] : memref<1x8x256xf32, #tpu.memory_space<vmem>>, vector<1x8x256xf32>
    %5 = vector.shape_cast %4 : vector<1x8x256xf32> to vector<8x256xf32>
    %c0_7 = arith.constant 0 : index
    %c11 = arith.constant 11 : index
    %6 = vector.load %arg8[%c0_7, %c11] : memref<8x384xf32, #tpu.memory_space<vmem>>, vector<8x256xf32>
    tpu.vector_store %arg8[%c0_7, %c11], %5 {strides = array<i32>} : memref<8x384xf32, #tpu.memory_space<vmem>>, vector<8x256xf32>,
    %c0_8 = arith.constant 0 : index
    %c0_9 = arith.constant 0 : index
    %c0_10 = arith.constant 0 : index
    %7 = vector.load %arg4[%c0_8, %c0_9, %c0_10] : memref<1x8x128xf32, #tpu.memory_space<vmem>>, vector<1x8x128xf32>
    %8 = vector.shape_cast %7 : vector<1x8x128xf32> to vector<8x128xf32>
    %9 = vector.extract_strided_slice %8 {offsets = [0, 0], sizes = [8, 117], strides = [1, 1]} : vector<8x128xf32> to vector<8x117xf32>
    %c0_11 = arith.constant 0 : index
    %c267 = arith.constant 267 : index
    %10 = vector.load %arg8[%c0_11, %c267] : memref<8x384xf32, #tpu.memory_space<vmem>>, vector<8x117xf32>
    tpu.vector_store %arg8[%c0_11, %c267], %9 {strides = array<i32>} : memref<8x384xf32, #tpu.memory_space<vmem>>, vector<8x117xf32>,
    %11 = tpu.iota {dimensions = array<i32: 1>} : vector<1x384xi32>
    %c256_i32 = arith.constant 256 : i32
    %12 = arith.muli %arg1, %c256_i32 : i32
    %c11_i32 = arith.constant 11 : i32
    %13 = arith.subi %12, %c11_i32 : i32
    %14 = vector.broadcast %13 : i32 to vector<1x384xi32>
    %15 = arith.addi %11, %14 : vector<1x384xi32>
    %c0_i32 = arith.constant 0 : i32
    %16 = vector.broadcast %c0_i32 : i32 to vector<1x384xi32>
    %17 = arith.cmpi sge, %15, %16 : vector<1x384xi32>
    %c1024_i32 = arith.constant 1024 : i32
    %18 = vector.broadcast %c1024_i32 : i32 to vector<1x384xi32>
    %19 = arith.cmpi slt, %15, %18 : vector<1x384xi32>
    %20 = arith.andi %17, %19 : vector<1x384xi1>
    %c0_12 = arith.constant 0 : index
    %c0_13 = arith.constant 0 : index
    %21 = vector.load %arg8[%c0_12, %c0_13] : memref<8x384xf32, #tpu.memory_space<vmem>>, vector<8x384xf32>
    %cst = arith.constant 0.000000e+00 : f32
    %22 = vector.shape_cast %20 : vector<1x384xi1> to vector<1x384xi1>
    %23 = vector.broadcast %22 : vector<1x384xi1> to vector<8x384xi1>
    %24 = vector.broadcast %cst : f32 to vector<8x384xf32>
    %25 = arith.select %23, %21, %24 : vector<8x384xi1>, vector<8x384xf32>
    %c0_14 = arith.constant 0 : index
    %c0_15 = arith.constant 0 : index
    %c0_16 = arith.constant 0 : index
    %26 = vector.load %arg5[%c0_14, %c0_15, %c0_16] : memref<3x24x8xf32, #tpu.memory_space<vmem>>, vector<1x24x8xf32>
    %27 = vector.shape_cast %26 : vector<1x24x8xf32> to vector<24x8xf32>
    %cst_17 = arith.constant dense<0.000000e+00> : vector<24x384xf32>
    %28 = tpu.matmul %27, %25, %cst_17 {dimension_numbers = #tpu.dot_dimension_numbers<[1], [0], [0], [1], [0, 0, 1, 1], [], []>} : vector<24x8xf32>, vector<8x384xf32>, vector<24x384xf32> -> vector<24x384xf32>
    %29 = vector.extract_strided_slice %28 {offsets = [0, 0], sizes = [8, 384], strides = [1, 1]} : vector<24x384xf32> to vector<8x384xf32>
    %c1_i32 = arith.constant 1 : i32
    %30 = tpu.dynamic_rotate %29 by %c1_i32 dim 1 : vector<8x384xf32>, i32 -> vector<8x384xf32>
    %31 = arith.addf %25, %30 : vector<8x384xf32>
    %32 = vector.extract_strided_slice %28 {offsets = [8, 0], sizes = [8, 384], strides = [1, 1]} : vector<24x384xf32> to vector<8x384xf32>
    %33 = arith.addf %31, %32 : vector<8x384xf32>
    %34 = vector.extract_strided_slice %28 {offsets = [16, 0], sizes = [8, 384], strides = [1, 1]} : vector<24x384xf32> to vector<8x384xf32>
    %c383_i32 = arith.constant 383 : i32
    %35 = tpu.dynamic_rotate %34 by %c383_i32 dim 1 : vector<8x384xf32>, i32 -> vector<8x384xf32>
    %36 = arith.addf %33, %35 : vector<8x384xf32>
    %cst_18 = arith.constant 2.000000e-01 : f32
    %37 = vector.broadcast %cst_18 : f32 to vector<8x384xf32>
    %38 = arith.mulf %37, %36 : vector<8x384xf32>
    %39 = arith.maximumf %36, %38 : vector<8x384xf32>
    %cst_19 = arith.constant 0.000000e+00 : f32
    %40 = vector.shape_cast %20 : vector<1x384xi1> to vector<1x384xi1>
    %41 = vector.broadcast %40 : vector<1x384xi1> to vector<8x384xi1>
    %42 = vector.broadcast %cst_19 : f32 to vector<8x384xf32>
    %43 = arith.select %41, %39, %42 : vector<8x384xi1>, vector<8x384xf32>
    %c1 = arith.constant 1 : index
    %c0_20 = arith.constant 0 : index
    %c0_21 = arith.constant 0 : index
    %44 = vector.load %arg5[%c1, %c0_20, %c0_21] : memref<3x24x8xf32, #tpu.memory_space<vmem>>, vector<1x24x8xf32>
    %45 = vector.shape_cast %44 : vector<1x24x8xf32> to vector<24x8xf32>
    %cst_22 = arith.constant dense<0.000000e+00> : vector<24x384xf32>
    %46 = tpu.matmul %45, %43, %cst_22 {dimension_numbers = #tpu.dot_dimension_numbers<[1], [0], [0], [1], [0, 0, 1, 1], [], []>} : vector<24x8xf32>, vector<8x384xf32>, vector<24x384xf32> -> vector<24x384xf32>
    %47 = vector.extract_strided_slice %46 {offsets = [0, 0], sizes = [8, 384], strides = [1, 1]} : vector<24x384xf32> to vector<8x384xf32>
    %c3_i32 = arith.constant 3 : i32
    %48 = tpu.dynamic_rotate %47 by %c3_i32 dim 1 : vector<8x384xf32>, i32 -> vector<8x384xf32>
    %49 = arith.addf %43, %48 : vector<8x384xf32>
    %50 = vector.extract_strided_slice %46 {offsets = [8, 0], sizes = [8, 384], strides = [1, 1]} : vector<24x384xf32> to vector<8x384xf32>
    %c1_i32_23 = arith.constant 1 : i32
    %51 = tpu.dynamic_rotate %50 by %c1_i32_23 dim 1 : vector<8x384xf32>, i32 -> vector<8x384xf32>
    %52 = arith.addf %49, %51 : vector<8x384xf32>
    %53 = vector.extract_strided_slice %46 {offsets = [16, 0], sizes = [8, 384], strides = [1, 1]} : vector<24x384xf32> to vector<8x384xf32>
    %c383_i32_24 = arith.constant 383 : i32
    %54 = tpu.dynamic_rotate %53 by %c383_i32_24 dim 1 : vector<8x384xf32>, i32 -> vector<8x384xf32>
    %55 = arith.addf %52, %54 : vector<8x384xf32>
    %cst_25 = arith.constant 2.000000e-01 : f32
    %56 = vector.broadcast %cst_25 : f32 to vector<8x384xf32>
    %57 = arith.mulf %56, %55 : vector<8x384xf32>
    %58 = arith.maximumf %55, %57 : vector<8x384xf32>
    %cst_26 = arith.constant 0.000000e+00 : f32
    %59 = vector.shape_cast %20 : vector<1x384xi1> to vector<1x384xi1>
    %60 = vector.broadcast %59 : vector<1x384xi1> to vector<8x384xi1>
    %61 = vector.broadcast %cst_26 : f32 to vector<8x384xf32>
    %62 = arith.select %60, %58, %61 : vector<8x384xi1>, vector<8x384xf32>
    %c2 = arith.constant 2 : index
    %c0_27 = arith.constant 0 : index
    %c0_28 = arith.constant 0 : index
    %63 = vector.load %arg5[%c2, %c0_27, %c0_28] : memref<3x24x8xf32, #tpu.memory_space<vmem>>, vector<1x24x8xf32>
    %64 = vector.shape_cast %63 : vector<1x24x8xf32> to vector<24x8xf32>
    %cst_29 = arith.constant dense<0.000000e+00> : vector<24x384xf32>
    %65 = tpu.matmul %64, %62, %cst_29 {dimension_numbers = #tpu.dot_dimension_numbers<[1], [0], [0], [1], [0, 0, 1, 1], [], []>} : vector<24x8xf32>, vector<8x384xf32>, vector<24x384xf32> -> vector<24x384xf32>
    %66 = vector.extract_strided_slice %65 {offsets = [0, 0], sizes = [8, 384], strides = [1, 1]} : vector<24x384xf32> to vector<8x384xf32>
    %c6_i32 = arith.constant 6 : i32
    %67 = tpu.dynamic_rotate %66 by %c6_i32 dim 1 : vector<8x384xf32>, i32 -> vector<8x384xf32>
    %68 = arith.addf %62, %67 : vector<8x384xf32>
    %69 = vector.extract_strided_slice %65 {offsets = [8, 0], sizes = [8, 384], strides = [1, 1]} : vector<24x384xf32> to vector<8x384xf32>
    %c2_i32 = arith.constant 2 : i32
    %70 = tpu.dynamic_rotate %69 by %c2_i32 dim 1 : vector<8x384xf32>, i32 -> vector<8x384xf32>
    %71 = arith.addf %68, %70 : vector<8x384xf32>
    %72 = vector.extract_strided_slice %65 {offsets = [16, 0], sizes = [8, 384], strides = [1, 1]} : vector<24x384xf32> to vector<8x384xf32>
    %c382_i32 = arith.constant 382 : i32
    %73 = tpu.dynamic_rotate %72 by %c382_i32 dim 1 : vector<8x384xf32>, i32 -> vector<8x384xf32>
    %74 = arith.addf %71, %73 : vector<8x384xf32>
    %cst_30 = arith.constant 2.000000e-01 : f32
    %75 = vector.broadcast %cst_30 : f32 to vector<8x384xf32>
    %76 = arith.mulf %75, %74 : vector<8x384xf32>
    %77 = arith.maximumf %74, %76 : vector<8x384xf32>
    %cst_31 = arith.constant 0.000000e+00 : f32
    %78 = vector.shape_cast %20 : vector<1x384xi1> to vector<1x384xi1>
    %79 = vector.broadcast %78 : vector<1x384xi1> to vector<8x384xi1>
    %80 = vector.broadcast %cst_31 : f32 to vector<8x384xf32>
    %81 = arith.select %79, %77, %80 : vector<8x384xi1>, vector<8x384xf32>
    %c0_32 = arith.constant 0 : index
    %c0_33 = arith.constant 0 : index
    %82 = vector.load %arg6[%c0_32, %c0_33] : memref<32x8xf32, #tpu.memory_space<vmem>>, vector<32x8xf32>
    %cst_34 = arith.constant dense<0.000000e+00> : vector<32x384xf32>
    %83 = tpu.matmul %82, %81, %cst_34 {dimension_numbers = #tpu.dot_dimension_numbers<[1], [0], [0], [1], [0, 0, 1, 1], [], []>} : vector<32x8xf32>, vector<8x384xf32>, vector<32x384xf32> -> vector<32x384xf32>
    %84 = vector.extract_strided_slice %83 {offsets = [8, 0], sizes = [8, 384], strides = [1, 1]} : vector<32x384xf32> to vector<8x384xf32>
    %85 = vector.extract_strided_slice %83 {offsets = [24, 0], sizes = [8, 384], strides = [1, 1]} : vector<32x384xf32> to vector<8x384xf32>
    %c1_i32_35 = arith.constant 1 : i32
    %86 = tpu.dynamic_rotate %85 by %c1_i32_35 dim 1 : vector<8x384xf32>, i32 -> vector<8x384xf32>
    %87 = arith.addf %84, %86 : vector<8x384xf32>
    %88 = vector.extract_strided_slice %87 {offsets = [0, 11], sizes = [8, 256], strides = [1, 1]} : vector<8x384xf32> to vector<8x256xf32>
    %cst_36 = arith.constant 2.000000e-01 : f32
    %89 = vector.broadcast %cst_36 : f32 to vector<8x256xf32>
    %90 = arith.mulf %89, %88 : vector<8x256xf32>
    %91 = arith.maximumf %88, %90 : vector<8x256xf32>
    %c0_37 = arith.constant 0 : index
    %c0_38 = arith.constant 0 : index
    %c0_39 = arith.constant 0 : index
    %c0_40 = arith.constant 0 : index
    %92 = vector.load %arg7[%c0_37, %c0_38, %c0_39, %c0_40] : memref<1x2x8x256xf32, #tpu.memory_space<vmem>>, vector<1x1x8x256xf32>
    %93 = vector.shape_cast %92 : vector<1x1x8x256xf32> to vector<8x256xf32>
    %94 = vector.shape_cast %91 : vector<8x256xf32> to vector<1x1x8x256xf32>
    tpu.vector_store %arg7[%c0_37, %c0_38, %c0_39, %c0_40], %94 {strides = array<i32>} : memref<1x2x8x256xf32, #tpu.memory_space<vmem>>, vector<1x1x8x256xf32>,
    %95 = vector.extract_strided_slice %83 {offsets = [0, 0], sizes = [8, 384], strides = [1, 1]} : vector<32x384xf32> to vector<8x384xf32>
    %c383_i32_41 = arith.constant 383 : i32
    %96 = tpu.dynamic_rotate %95 by %c383_i32_41 dim 1 : vector<8x384xf32>, i32 -> vector<8x384xf32>
    %97 = vector.extract_strided_slice %83 {offsets = [16, 0], sizes = [8, 384], strides = [1, 1]} : vector<32x384xf32> to vector<8x384xf32>
    %98 = arith.addf %96, %97 : vector<8x384xf32>
    %99 = vector.extract_strided_slice %98 {offsets = [0, 11], sizes = [8, 256], strides = [1, 1]} : vector<8x384xf32> to vector<8x256xf32>
    %cst_42 = arith.constant 2.000000e-01 : f32
    %100 = vector.broadcast %cst_42 : f32 to vector<8x256xf32>
    %101 = arith.mulf %100, %99 : vector<8x256xf32>
    %102 = arith.maximumf %99, %101 : vector<8x256xf32>
    %c0_43 = arith.constant 0 : index
    %c1_44 = arith.constant 1 : index
    %c0_45 = arith.constant 0 : index
    %c0_46 = arith.constant 0 : index
    %103 = vector.load %arg7[%c0_43, %c1_44, %c0_45, %c0_46] : memref<1x2x8x256xf32, #tpu.memory_space<vmem>>, vector<1x1x8x256xf32>
    %104 = vector.shape_cast %103 : vector<1x1x8x256xf32> to vector<8x256xf32>
    %105 = vector.shape_cast %102 : vector<8x256xf32> to vector<1x1x8x256xf32>
    tpu.vector_store %arg7[%c0_43, %c1_44, %c0_45, %c0_46], %105 {strides = array<i32>} : memref<1x2x8x256xf32, #tpu.memory_space<vmem>>, vector<1x1x8x256xf32>,
    return
  }
  func.func @transform_0(%arg0: i32, %arg1: i32) -> (i32, i32, i32) {
    %c2_i32 = arith.constant 2 : i32
    %0 = arith.muli %arg1, %c2_i32 : i32
    %c1_i32 = arith.constant 1 : i32
    %1 = arith.subi %0, %c1_i32 : i32
    %c0_i32 = arith.constant 0 : i32
    %2 = arith.maxsi %1, %c0_i32 : i32
    %c0_i32_0 = arith.constant 0 : i32
    %c0_i32_1 = arith.constant 0 : i32
    return %arg0, %c0_i32_0, %2 : i32, i32, i32
  }
  func.func @transform_1(%arg0: i32, %arg1: i32) -> (i32, i32, i32) {
    %c0_i32 = arith.constant 0 : i32
    %c0_i32_0 = arith.constant 0 : i32
    return %arg0, %c0_i32, %arg1 : i32, i32, i32
  }
  func.func @transform_2(%arg0: i32, %arg1: i32) -> (i32, i32, i32) {
    %c2_i32 = arith.constant 2 : i32
    %0 = arith.muli %arg1, %c2_i32 : i32
    %c2_i32_0 = arith.constant 2 : i32
    %1 = arith.addi %0, %c2_i32_0 : i32
    %c7_i32 = arith.constant 7 : i32
    %2 = arith.minsi %1, %c7_i32 : i32
    %c0_i32 = arith.constant 0 : i32
    %c0_i32_1 = arith.constant 0 : i32
    return %arg0, %c0_i32, %2 : i32, i32, i32
  }
  func.func @transform_3(%arg0: i32, %arg1: i32) -> (i32, i32, i32) {
    %c0_i32 = arith.constant 0 : i32
    %c0_i32_0 = arith.constant 0 : i32
    %c0_i32_1 = arith.constant 0 : i32
    %c0_i32_2 = arith.constant 0 : i32
    return %c0_i32, %c0_i32_0, %c0_i32_1 : i32, i32, i32
  }
  func.func @transform_4(%arg0: i32, %arg1: i32) -> (i32, i32) {
    %c0_i32 = arith.constant 0 : i32
    %c0_i32_0 = arith.constant 0 : i32
    %c0_i32_1 = arith.constant 0 : i32
    return %c0_i32, %c0_i32_0 : i32, i32
  }
  func.func @transform_5(%arg0: i32, %arg1: i32) -> (i32, i32, i32, i32) {
    %c0_i32 = arith.constant 0 : i32
    %c0_i32_0 = arith.constant 0 : i32
    %c0_i32_1 = arith.constant 0 : i32
    return %arg0, %c0_i32, %c0_i32_0, %arg1 : i32, i32, i32, i32
  }
}

</mosaic_0001>

<bundles_post_ra>
// kernel: forward.1
= control target key start
LH: loop header
LB: loop body
LE: loop exit
PB: predicated region body
PF: predicated region fallthrough
CT: control target
= control target key end

     0   :  { %s2917_s0 = inlined_call_operand.hbm [shape: f32[2,8,1024], index: 0, kind: input, shape index: {}, may-alias: {0,1,2}]   ;;  %s2918_s1 = inlined_call_operand.hbm [shape: f32[2,8,1024], index: 1, kind: input, shape index: {}, may-alias: {0,1,2}]   ;;  %s2919_s2 = inlined_call_operand.hbm [shape: f32[2,8,1024], index: 2, kind: input, shape index: {}, may-alias: {0,1,2}]   ;;  %s2920_s3 = inlined_call_operand.hbm [shape: f32[3,24,8], index: 3, kind: input, shape index: {}]   ;;  %s2921_s4 = inlined_call_operand.hbm [shape: f32[32,8], index: 4, kind: input, shape index: {}]   ;;  %s2922_s5 = inlined_call_operand.hbm [shape: f32[2,2,8,1024], index: 5, kind: output, shape index: {}]  }
   0x1   :  { %2953 = sst [smem:[#allocation33_spill]] %s2918_s1 }
   0x2   :  { %2954 = sst [smem:[#allocation34_spill]] %s2919_s2 }
   0x3   :  { %2955 = sst [smem:[#allocation35_spill]] %s2920_s3 }
   0x4   :  { %2956 = sst [smem:[#allocation36_spill]] %s2921_s4 }
   0x5   :  { %2957 = sst [smem:[#allocation37_spill]] %s2922_s5 }
   0x6   :  { %10 = vsyncpa [#allocation4], 0 }
   0x7   :  { %12 = vsyncpa [#allocation4 + $0x1], 0 }
   0x8   :  { %13 = vsyncpa [#allocation7], 0 }
   0x9   :  { %15 = vsyncpa [#allocation7 + $0x1], 0 }
   0xa   :  { %16 = vsyncpa [#allocation10], 0 }
   0xb   :  { %17 = vsyncpa [#allocation5], 0 }
   0xc   :  { %19 = vsyncpa [#allocation5 + $0x1], 0  ;;  %s2220_s18 = smov 0   ;;  %s2222_s19 = smov 0  }
   0xd   :  { %s2224_s20 = smov 0   ;;  %s2226_s21 = smov 0  }
   0xe   :  { %s2228_s22 = smov 0   ;;  %s2230_s23 = smov 0  }
   0xf   :  { %s2232_s24 = smov 0   ;;  %s2234_s25 = smov 0  }
  0x10   :  { %s2236_s26 = smov 0   ;;  %s2238_s27 = smov 0  }
  0x11   :  { %s2240_s28 = smov 0   ;;  %s2242_s29 = smov 0  }
  0x12   :  { %s2244_s30 = smov 0   ;;  %s2246_s6 = smov 0  }
  0x13 LB: > { %2958 = sst [smem:[#allocation18_spill]] %s2115_s18  ;;  %s2291_s7 = sadd.s32 4294967295, %s2167_s6   ;;  %s2167_s6 = sphi %s2246_s6, %s25_s6   ;;  %s2163_s30 = sphi %s2244_s30, %s3039_s30   ;;  %s2159_s29 = sphi %s2242_s29, %s3038_s29   ;;  %s2155_s28 = sphi %s2240_s28, %s3049_s28   ;;  %s2151_s27 = sphi %s2238_s27, %s3036_s27   ;;  %s2147_s26 = sphi %s2236_s26, %s3048_s26   ;;  %s2143_s25 = sphi %s2234_s25, %s3047_s25   ;;  %s2139_s24 = sphi %s2232_s24, %s3046_s24   ;;  %s2135_s23 = sphi %s2230_s23, %s3045_s23   ;;  %s2131_s22 = sphi %s2228_s22, %s3044_s22   ;;  %s2127_s21 = sphi %s2226_s21, %s3043_s21   ;;  %s2123_s20 = sphi %s2224_s20, %s3042_s20   ;;  %s2119_s19 = sphi %s2222_s19, %s3041_s19   ;;  %s2115_s18 = sphi %s2220_s18, %s3034_s18  }
  0x14   : > { %2959 = sst [smem:[#allocation19_spill]] %s2119_s19  ;;  %p1559_p0 = scmp.ge.s32.totalorder %s2167_s6, 1 }
  0x15   : > { %2960 = sst [smem:[#allocation20_spill]] %s2127_s21  ;;  %p2923_p1 = scmp.eq.s32.totalorder %s2291_s7, 0 }
  0x16   : > { %2961 = sst [smem:[#allocation21_spill]] %s2131_s22  ;;  %p212_p2 = scmp.lt.s32.totalorder %s2167_s6, 9 }
  0x17   : > { %2962 = sst [smem:[#allocation22_spill]] %s2151_s27  ;;  %s2169_s9 = smov [#allocation9]  }
  0x18   : > { %2963 = sst [smem:[#allocation23_spill]] %s2155_s28  ;;  %p2296_p3 = pnand %p1559_p0, %p212_p2 }
  0x19   : > { %2964 = sst [smem:[#allocation24_spill]] %s2159_s29  ;;  %s224_s10 = sshll.u32 %s2169_s9, 4  ;;  %s225_s10 = int_to_ptr.vmem [resolvable:$true] %s224_s10 }
  0x1a   : > { %2965 = sst [smem:[#allocation25_spill]] %s2163_s30  ;;  %p1707_p4 = pneg %p2296_p3 }
  0x1b   : > { %s2966_s8 = scalar_select %p2296_p3, 1, 0 }
  0x1c   : > { %p2304_p5 = pnand %p1707_p4, %p2923_p1  ;;  %s2969_s3 = sld [smem:[#allocation35_spill]] }
  0x1d   : > { %2967 = sst [smem:[#allocation26_spill]] %s2966_s8 }
  0x1e   : > { %p2942_p7 = pneg %p2304_p5 }
  0x22   : > { %s1863_s14 = scalar_lea.hbm %s2969_s3, 1152 }
  0x23   : > { %p1864_p6 = scmp.ne.s32.totalorder %s2969_s3, %s1863_s14  ;;  %p1870_p10 = scmp.lt.u32.totalorder %s1863_s14, %s2969_s3 }
  0x25   : > { %p1866_p8 = pnand %p2942_p7, %p1864_p6 }
  0x27   : > { %p1867_p9 = pneg %p1866_p8 }
  0x29   : > { %p1872_p11 = pnand %p1870_p10, %p1867_p9 }
  0x2b   : > { %1875 = shalt.err (!%p1872_p11)
}
  0x2c   : > { %s1876_s12 = scalar_lea.vmem %s225_s10, 1152  ;;  %p1884_p2 = scmp.lt.s32.totalorder %s225_s10, %s225_s10 }
  0x2d   : > { %p1877_p12 = scmp.ne.s32.totalorder %s225_s10, %s1876_s12  ;;  %p1885_p4 = scmp.lt.s32.totalorder %s1876_s12, %s1876_s12 }
  0x2f   : > { %p1879_p13 = pnand %p1877_p12, %p2942_p7  ;;  %p1886_p1 = por %p1885_p4, %p1884_p2 }
  0x31   : > { %p1880_p0 = pneg %p1879_p13 }
  0x33   : > { %p1887_p3 = pnand %p1886_p1, %p1880_p0 }
  0x35   : > { %1890 = shalt.err (!%p1887_p3)
}
  0x36   : > { %s2926_s13 = smov 128   ;;  %s2927_s14 = smov 8  }
  0x37   : > { %1710 = dma.hbm_to_vmem [thread:$0]  (!%p2304_p5), %s2969_s3, 1152, %s225_s10, [#allocation10], %s2926_s13, %s2926_s13, %s2927_s14  }
  0x38   : > { %s1552_s17 = sadd.s32 4294967294, %s2167_s6   ;;  %s34_s9 = sadd.s32 1, %s2159_s29 }
  0x39   : > { %s37_s12 = sadd.s32 1, %s2163_s30  ;;  %p35_p1 = scmp.ge.s32.totalorder %s34_s9, 4 }
  0x3a   : > { %s2337_s5 = sshll.u32 %s2159_s29, 1  ;;  %p2941_p3 = scmp.eq.s32.totalorder %s2167_s6, 0 }
  0x3b   : > { %s3051_s9 = smov (%p35_p1, %s34_s9), 0  ;;  %s3053_s12 = smov (!%p35_p1, %s37_s12), %s2163_s30 }
  0x3c   : > { %2970 = sst [smem:[#allocation27_spill]] %s3051_s9  ;;  %p89_p6 = scmp.ne.s32.totalorder %s2135_s23, %s2131_s22 }
  0x3d   : > { %p95_p8 = scmp.ne.s32.totalorder %s2131_s22, %s2127_s21  ;;  %s2928_s15 = sadd.s32 2, %s2337_s5 }
  0x3e   : > { %p2355_p9 = por %p89_p6, %p2941_p3  ;;  %p2361_p10 = scmp.lt.s32.totalorder %s2928_s15, 7 }
  0x3f   : > { %p2973_p11 = scmp.eq.s32.totalorder %s2291_s7, 0  ;;  %p199_p13 = scmp.eq.s32.totalorder %s2291_s7, 7 }
  0x40   : > { %s2972_s28 = scalar_select %p2361_p10, 1, 0 }
  0x41   : > { %p2367_p12 = por %p95_p8, %p2973_p11  ;;  %p205_p0 = scmp.eq.s32.totalorder %s1552_s17, 7 }
  0x42   : > { %p2940_p2 = scmp.lt.s32.totalorder %s2167_s6, 8  ;;  %p2373_p4 = por %p199_p13, %p89_p6 }
  0x43   : > { %s2974_s13 = scalar_select %p2367_p12, 1, 0 }
  0x44   : > { %s2976_s10 = scalar_select %p2373_p4, 1, 0 }
  0x45   : > { %2975 = sst [smem:[#allocation28_spill]] %s2974_s13  ;;  %s2378_s14 = sshll.u32 %s2163_s30, 3 }
  0x46   : > { %2977 = sst [smem:[#allocation29_spill]] %s2976_s10  ;;  %p2380_p1 = por %p205_p0, %p95_p8 }
  0x47   : > { %s275_s3 = sand.u32 1, %s2167_s6   ;;  %s277_s21 = sand.u32 1, %s2135_s23  }
  0x48   : > { %s2978_s15 = scalar_select %p2380_p1, 1, 0 }
  0x49   : > { %s1568_s27 = sshll.u32 %s277_s21, 4  ;;  %s285_s13 = sadd.s32 %s2378_s14, %s2337_s5 }
  0x4a   : > { %2979 = sst [smem:[#allocation30_spill]] %s2978_s15  ;;  %s1571_s22 = sshll.u32 %s285_s13, 7 }
  0x4b   : > { %s2980_s1 = sld [smem:[#allocation33_spill]]  ;;  %s279_s10 = scalar_lea.vmem [#allocation6], %s1568_s27 }
  0x4c   : > { %s289_s18 = sshll.u32 %s279_s10, 4  ;;  %p2399_p6 = pnand %p2940_p2, %p2355_p9  ;;  %s2393_s18 = int_to_ptr.vmem [resolvable:$true] %s289_s18 }
  0x4d   : > { %s2172_s21 = smov [#allocation11]  }
  0x4e   : > { %s2403_s2 = sshll.u32 %s2172_s21, 4  ;;  %p1893_p11 = pneg %p2399_p6  ;;  %s238_s2 = int_to_ptr.vmem [resolvable:$true] %s2403_s2 }
  0x51   : > { %s2391_s17 = scalar_lea.hbm %s2980_s1, %s1571_s22  ;;  %s2405_s22 = scalar_lea.sflag [#allocation7], %s275_s3 }
  0x52   : > { %s1891_s8 = scalar_lea.hbm %s2391_s17, 256  ;;  %s1896_s10 = scalar_lea.hbm %s2980_s1, 2048 }
  0x53   : > { %p1892_p8 = scmp.ne.s32.totalorder %s2391_s17, %s1891_s8  ;;  %p1897_p9 = scmp.lt.u32.totalorder %s2391_s17, %s2980_s1 }
  0x54   : > { %p1898_p2 = scmp.lt.u32.totalorder %s1896_s10, %s1891_s8  ;;  %p1900_p7 = scmp.lt.u32.totalorder %s1891_s8, %s2391_s17 }
  0x55   : > { %p1894_p13 = pnand %p1893_p11, %p1892_p8 }
  0x56   : > { %p1899_p3 = por %p1898_p2, %p1897_p9 }
  0x57   : > { %p1895_p0 = pneg %p1894_p13 }
  0x58   : > { %p1901_p1 = por %p1900_p7, %p1899_p3 }
  0x5a   : > { %p1902_p4 = pnand %p1901_p1, %p1895_p0 }
  0x5c   : > { %1905 = shalt.err (!%p1902_p4)
}
  0x5d   : > { %s1906_s3 = scalar_lea.vmem %s2393_s18, 256  ;;  %s2173_s21 = smov [#allocation6]  }
  0x5e   : > { %p1907_p8 = scmp.ne.s32.totalorder %s2393_s18, %s1906_s3  ;;  %s1911_s27 = sshll.u32 %s2173_s21, 4  ;;  %s1912_s27 = int_to_ptr.vmem [resolvable:$false] %s1911_s27 }
  0x5f   : > { %s1913_s19 = scalar_lea.vmem %s1912_s27, 512  ;;  %p1914_p10 = scmp.lt.s32.totalorder %s2393_s18, %s1912_s27 }
  0x60   : > { %p1909_p13 = pnand %p1907_p8, %p1893_p11  ;;  %p1915_p2 = scmp.lt.s32.totalorder %s1913_s19, %s1906_s3 }
  0x62   : > { %p1910_p12 = pneg %p1909_p13  ;;  %p1916_p9 = por %p1915_p2, %p1914_p10 }
  0x64   : > { %p1917_p7 = pnand %p1916_p9, %p1910_p12 }
  0x66   : > { %1920 = shalt.err (!%p1917_p7)
}
  0x67   : > { %1720 = dma.hbm_to_vmem [thread:$0]  (!%p2399_p6), %s2391_s17, 256, %s2393_s18, %s2405_s22  }
  0x68   : > { %s2982_s4 = sld [smem:[#allocation36_spill]]  ;;  %p2983_p10 = pneg %p2304_p5 }
  0x6e   : > { %s1921_s10 = scalar_lea.hbm %s2982_s4, 512 }
  0x6f   : > { %p1922_p3 = scmp.ne.s32.totalorder %s2982_s4, %s1921_s10  ;;  %p1928_p1 = scmp.lt.u32.totalorder %s1921_s10, %s2982_s4 }
  0x71   : > { %p1924_p12 = pnand %p1922_p3, %p2983_p10 }
  0x73   : > { %p1925_p4 = pneg %p1924_p12 }
  0x75   : > { %p1930_p11 = pnand %p1928_p1, %p1925_p4 }
  0x77   : > { %1933 = shalt.err (!%p1930_p11)
}
  0x78   : > { %s1934_s18 = scalar_lea.vmem %s238_s2, 512  ;;  %p2984_p0 = pmov %p2983_p10 }
  0x79   : > { %p1935_p6 = scmp.ne.s32.totalorder %s238_s2, %s1934_s18  ;;  %p1942_p2 = scmp.lt.s32.totalorder %s238_s2, %s238_s2 }
  0x7a   : > { %p1943_p9 = scmp.lt.s32.totalorder %s1934_s18, %s1934_s18 }
  0x7b   : > { %p1937_p8 = pnand %p1935_p6, %p2984_p0 }
  0x7c   : > { %p1944_p7 = por %p1943_p9, %p1942_p2 }
  0x7d   : > { %p1938_p13 = pneg %p1937_p8 }
  0x7f   : > { %p1945_p3 = pnand %p1944_p7, %p1938_p13 }
  0x81   : > { %1948 = shalt.err (!%p1945_p3)
}
  0x82   : > { %s2985_s17 = smov 8   ;;  %s2986_s27 = smov 128  }
  0x83   : > { %1713 = dma.hbm_to_vmem [thread:$0]  (!%p2304_p5), %s2982_s4, 512, %s238_s2, [#allocation10], %s2986_s27, %s2986_s27, %s2985_s17  }
  0x84   : > { %p39_p10 = scmp.ge.s32.totalorder %s3053_s12, 2  ;;  %s1554_s11 = sadd.s32 4294967295, %s2337_s5 }
  0x85   : > { %p43_p12 = scmp.gt.s32.totalorder %s1554_s11, 0  ;;  %s1555_s13 = sshll.u32 %s3051_s9, 1 }
  0x86   : > { %s3055_s12 = smov (%p39_p10, %s3053_s12), 0  ;;  %s1556_s10 = sadd.s32 4294967295, %s1555_s13 }
  0x87   : > { %2987 = sst [smem:[#allocation31_spill]] %s3055_s12  ;;  %s3057_s11 = smov (!%p43_p12, %s1554_s11), 0 }
  0x88   : > { %s2465_s16 = ssub.s32 %s2163_s30, %s3055_s12  ;;  %p47_p4 = scmp.gt.s32.totalorder %s1556_s10, 0 }
  0x89   : > { %s54_s2 = sadd.s32 1, %s2147_s26  ;;  %p61_p5 = scmp.ne.s32.totalorder %s2147_s26, %s2143_s25 }
  0x8a   : > { %p67_p1 = scmp.ne.s32.totalorder %s2143_s25, %s2139_s24  ;;  %s3059_s10 = smov (!%p47_p4, %s1556_s10), 0 }
  0x8b   : > { %p2988_p11 = scmp.eq.s32.totalorder %s2167_s6, 0  ;;  %p2990_p0 = scmp.eq.s32.totalorder %s2291_s7, 0 }
  0x8c   : > { %s50_s3 = ssub.s32 %s3057_s11, %s3059_s10  ;;  %s2993_s18 = ssub.s32 %s2159_s29, %s3051_s9 }
  0x8d   : > { %p2474_p6 = por %p2988_p11, %p61_p5  ;;  %p2480_p8 = por %p2990_p0, %p67_p1 }
  0x8e   : > { %s79_s17 = sor.u32 %s2993_s18, %s2465_s16  ;;  %s51_s27 = sor.u32 %s50_s3, %s2465_s16 }
  0x8f   : > { %s2991_s15 = scalar_select %p2480_p8, 1, 0 }
  0x90   : > { %p80_p13 = scmp.eq.s32.totalorder %s79_s17, 0  ;;  %p52_p2 = scmp.eq.s32.totalorder %s51_s27, 0 }
  0x91   : > { %2992 = sst [smem:[#allocation32_spill]] %s2991_s15  ;;  %s2489_s24 = sadd.s32 2, %s1555_s13 }
  0x92   : > { %s2994_s19 = sadd.s32 1, %s2135_s23  ;;  %s251_s4 = sand.u32 1, %s2147_s26  }
  0x93   : > { %s2494_s8 = scalar_select %p80_p13, %s2135_s23, %s2994_s19  }
  0x94   : > { %s2497_s1 = scalar_select %p52_p2, %s2147_s26, %s54_s2  }
  0x95   : > { %s1563_s12 = sshll.u32 %s251_s4, 3  ;;  %s264_s30 = sadd.s32 %s2378_s14, %s3057_s11 }
  0x96   : > { %s1567_s10 = sshll.u32 %s264_s30, 7  ;;  %s255_s9 = scalar_lea.vmem [#allocation3], %s1563_s12 }
  0x97   : > { %s268_s18 = sshll.u32 %s255_s9, 4  ;;  %s2505_s3 = scalar_lea.hbm %s2917_s0, %s1567_s10  ;;  %s2507_s18 = int_to_ptr.vmem [resolvable:$true] %s268_s18 }
  0x98   : > { %p2995_p7 = scmp.lt.s32.totalorder %s2167_s6, 8  ;;  %s252_s30 = scalar_lea.sflag [#allocation4], %s251_s4 }
  0x99   : > { %s1949_s9 = scalar_lea.hbm %s2505_s3, 128  ;;  %s1954_s11 = scalar_lea.hbm %s2917_s0, 2048 }
  0x9a   : > { %p2513_p3 = pnand %p2995_p7, %p2474_p6  ;;  %p1950_p10 = scmp.ne.s32.totalorder %s2505_s3, %s1949_s9 }
  0x9b   : > { %p1955_p1 = scmp.lt.u32.totalorder %s2505_s3, %s2917_s0  ;;  %p1956_p11 = scmp.lt.u32.totalorder %s1954_s11, %s1949_s9 }
  0x9c   : > { %p1951_p12 = pneg %p2513_p3  ;;  %p1958_p0 = scmp.lt.u32.totalorder %s1949_s9, %s2505_s3 }
  0x9d   : > { %p1957_p6 = por %p1956_p11, %p1955_p1 }
  0x9e   : > { %p1952_p4 = pnand %p1951_p12, %p1950_p10 }
  0x9f   : > { %p1959_p13 = por %p1958_p0, %p1957_p6 }
  0xa0   : > { %p1953_p5 = pneg %p1952_p4 }
  0xa2   : > { %p1960_p2 = pnand %p1959_p13, %p1953_p5 }
  0xa4   : > { %1963 = shalt.err (!%p1960_p2)
}
  0xa5   : > { %s1964_s4 = scalar_lea.vmem %s2507_s18, 128  ;;  %s2174_s15 = smov [#allocation3]  }
  0xa6   : > { %p1965_p7 = scmp.ne.s32.totalorder %s2507_s18, %s1964_s4  ;;  %s1969_s17 = sshll.u32 %s2174_s15, 4  ;;  %s1970_s17 = int_to_ptr.vmem [resolvable:$false] %s1969_s17 }
  0xa7   : > { %s1971_s27 = scalar_lea.vmem %s1970_s17, 256  ;;  %p1972_p9 = scmp.lt.s32.totalorder %s2507_s18, %s1970_s17 }
  0xa8   : > { %p1967_p10 = pnand %p1965_p7, %p1951_p12  ;;  %p1973_p1 = scmp.lt.s32.totalorder %s1971_s27, %s1964_s4 }
  0xaa   : > { %p1968_p4 = pneg %p1967_p10  ;;  %p1974_p11 = por %p1973_p1, %p1972_p9 }
  0xac   : > { %p1975_p6 = pnand %p1974_p11, %p1968_p4 }
  0xae   : > { %1978 = shalt.err (!%p1975_p6)
}
  0xaf   : > { %s2997_s19 = sld [smem:[#allocation19_spill]]  ;;  %s2998_s10 = sld [smem:[#allocation18_spill]] }
  0xb0   : > { %1717 = dma.hbm_to_vmem [thread:$0]  (!%p2513_p3), %s2505_s3, 128, %s2507_s18, %s252_s30  }
  0xb1   : > { %s2999_s9 = sadd.s32 2, %s2337_s5  ;;  %p3000_p9 = scmp.ne.s32.totalorder %s2972_s28, 0 }
  0xb2   : > { %p3001_p12 = scmp.lt.s32.totalorder %s2489_s24, 7  ;;  %s118_s13 = sadd.s32 1, %s2123_s20 }
  0xb3   : > { %s3061_s9 = smov (!%p3000_p9, %s2999_s9), 7  ;;  %p3002_p13 = scmp.eq.s32.totalorder %s2167_s6, 0 }
  0xb4   : > { %s3063_s24 = smov (!%p3001_p12, %s2489_s24), 7  ;;  %p3003_p10 = scmp.eq.s32.totalorder %s2291_s7, 0 }
  0xb5   : > { %p125_p5 = scmp.ne.s32.totalorder %s2123_s20, %s2997_s19  ;;  %s114_s29 = ssub.s32 %s3061_s9, %s3063_s24 }
  0xb6   : > { %p131_p0 = scmp.ne.s32.totalorder %s2997_s19, %s2998_s10  ;;  %s115_s12 = sor.u32 %s114_s29, %s2465_s16 }
  0xb7   : > { %p127_p2 = por %p125_p5, %p3002_p13  ;;  %p116_p7 = scmp.eq.s32.totalorder %s115_s12, 0 }
  0xb8   : > { %p2559_p4 = por %p131_p0, %p3003_p10  ;;  %s298_s18 = sand.u32 1, %s2123_s20  }
  0xb9   : > { %s309_s5 = sadd.s32 %s2378_s14, %s3061_s9  ;;  %s1572_s3 = sshll.u32 %s298_s18, 3 }
  0xba   : > { %s3004_s11 = scalar_select %p2559_p4, 1, 0 }
  0xbb   : > { %s2566_s28 = scalar_select %p116_p7, %s2123_s20, %s118_s13  }
  0xbc   : > { %s1575_s30 = sshll.u32 %s309_s5, 7  ;;  %s3005_s4 = sld [smem:[#allocation34_spill]] }
  0xbd   : > { %s300_s16 = scalar_lea.vmem [#allocation8], %s1572_s3  ;;  %p3006_p3 = scmp.lt.s32.totalorder %s2167_s6, 8 }
  0xbe   : > { %s313_s15 = sshll.u32 %s300_s16, 4  ;;  %s314_s15 = int_to_ptr.vmem [resolvable:$true] %s313_s15 }
  0xbf   : > { %p2575_p1 = pnand %p3006_p3, %p127_p2 }
  0xc1   : > { %p1981_p6 = pneg %p2575_p1 }
  0xc2   : > { %s2571_s24 = scalar_lea.hbm %s3005_s4, %s1575_s30  ;;  %s1984_s10 = scalar_lea.hbm %s3005_s4, 2048 }
  0xc3   : > { %s1979_s14 = scalar_lea.hbm %s2571_s24, 128  ;;  %p1985_p5 = scmp.lt.u32.totalorder %s2571_s24, %s3005_s4 }
  0xc4   : > { %p1980_p11 = scmp.ne.s32.totalorder %s2571_s24, %s1979_s14  ;;  %p1986_p0 = scmp.lt.u32.totalorder %s1984_s10, %s1979_s14 }
  0xc5   : > { %p1988_p2 = scmp.lt.u32.totalorder %s1979_s14, %s2571_s24 }
  0xc6   : > { %p1982_p9 = pnand %p1981_p6, %p1980_p11  ;;  %p1987_p13 = por %p1986_p0, %p1985_p5 }
  0xc8   : > { %p1983_p12 = pneg %p1982_p9  ;;  %p1989_p7 = por %p1988_p2, %p1987_p13 }
  0xca   : > { %p1990_p10 = pnand %p1989_p7, %p1983_p12 }
  0xcc   : > { %1993 = shalt.err (!%p1990_p10)
}
  0xcd   : > { %s1994_s29 = scalar_lea.vmem %s314_s15, 128  ;;  %s2175_s12 = smov [#allocation8]  }
  0xce   : > { %p1995_p3 = scmp.ne.s32.totalorder %s314_s15, %s1994_s29  ;;  %s1999_s18 = sshll.u32 %s2175_s12, 4  ;;  %s2000_s18 = int_to_ptr.vmem [resolvable:$false] %s1999_s18 }
  0xcf   : > { %s2001_s5 = scalar_lea.vmem %s2000_s18, 256  ;;  %p2002_p4 = scmp.lt.s32.totalorder %s314_s15, %s2000_s18 }
  0xd0   : > { %p1997_p11 = pnand %p1995_p3, %p1981_p6  ;;  %p2003_p8 = scmp.lt.s32.totalorder %s2001_s5, %s1994_s29 }
  0xd2   : > { %p1998_p9 = pneg %p1997_p11  ;;  %p2004_p0 = por %p2003_p8, %p2002_p4 }
  0xd4   : > { %p2005_p5 = pnand %p2004_p0, %p1998_p9 }
  0xd6   : > { %2008 = shalt.err (!%p2005_p5)
}
  0xd7   : > { %1723 = dma.hbm_to_vmem [thread:$0]  (!%p2575_p1), %s2571_s24, 128, %s314_s15, %s2405_s22  }
  0xd8   : > { %s3008_s3 = sld [smem:[#allocation26_spill]] }
  0xde   : > { %p3009_p12 = scmp.ne.s32.totalorder %s3008_s3, 0 }
  0xdf   : > { %s3010_s30 = sld [smem:[#allocation32_spill]] (!%p3009_p12)  ;;  %s324_s2 = sand.u32 (!%p3009_p12), 1, %s2143_s25  }
  0xe0   : > { %322 = sbr.rel (%p3009_p12) target bundleno = 1921 (0x781), region = 40  ;;  %s1577_s21 = sshll.u32 (!%p3009_p12), %s324_s2, 3 }
  0xe1   : > { %s325_s16 = scalar_lea.sflag (!%p3009_p12), [#allocation4], %s324_s2  ;;  %s328_s14 = scalar_lea.vmem (!%p3009_p12), [#allocation3], %s1577_s21 }
  0xe5   : > { %p3011_p6 = scmp.ne.s32.totalorder (!%p3009_p12), %s3010_s30, 0 }
  0xe7   : > { %2094 = dma.done.wait (%p3011_p6), %s325_s16, 128  }
  0xe8   : > { %2096 = vsyncadd (%p3011_p6), %s325_s16, 4294967168  ;;  %s3012_s27 = sld [smem:[#allocation21_spill]]  ;;  %s3013_s17 = sld [smem:[#allocation28_spill]] }
  0xe9   : > { %s333_s19 = sand.u32 1, %s2291_s7  }
  0xea   : > { %s334_s24 = scalar_lea.sflag [#allocation7], %s333_s19 }
  0xee   : > { %s2610_s10 = sand.u32 1, %s3012_s27   ;;  %p3014_p8 = scmp.ne.s32.totalorder %s3013_s17, 0 }
  0xef   : > { %s1578_s22 = sshll.u32 %s2610_s10, 4 }
  0xf0   : > { %s337_s15 = scalar_lea.vmem [#allocation6], %s1578_s22 }
  0xf1   : > { %2098 = dma.done.wait (%p3014_p8), %s334_s24, 256  }
  0xf2   : > { %2100 = vsyncadd (%p3014_p8), %s334_s24, 4294967040  ;;  %s3015_s9 = sld [smem:[#allocation19_spill]]  ;;  %p3016_p4 = scmp.ne.s32.totalorder %s3004_s11, 0 }
  0xf8   : > { %s344_s13 = sand.u32 1, %s3015_s9  }
  0xf9   : > { %s1579_s29 = sshll.u32 %s344_s13, 3 }
  0xfa   : > { %s346_s12 = scalar_lea.vmem [#allocation8], %s1579_s29 }
  0xfb   : > { %2102 = dma.done.wait (%p3016_p4), %s334_s24, 128  }
  0xfc   : > { %2104 = vsyncadd (%p3016_p4), %s334_s24, 4294967168  ;;  %p3017_p1 = scmp.eq.s32.totalorder %s2291_s7, 0 }
  0xfe   : > { %2106 = dma.done.wait (%p3017_p1), [#allocation10], 1664   ;;  %p3018_p13 = pmov %p3017_p1 }
  0xff   : > { %s3019_s18 = sld [smem:[#allocation22_spill]]  ;;  %v2176_v0 = vmov 0.0   ;;  %v408_v1 = vld [vmem:[%s337_s15] sm:$0xff]  ;;  %v401_v2 = vld [vmem:[%s328_s14] sm:$0xff]  ;;  %s2177_s5 = smov 11   ;;  %v430_v5 = vlaneseq  ;;  %vm406_vm0 = vcmask 89088  }
 0x100   : > { %2108 = vsyncadd (%p3018_p13), [#allocation10], 4294965632  ;;  %538 = vmatprep.mubr.f32.mxu0 %v2176_v0  ;;  %550 = vmatprep.mubr.f32.mxu1 %v2176_v0  ;;  %v409_v3 = vld [vmem:[%s337_s15 + $0x8] sm:$0xff]  ;;  %v424_v4 = vld [vmem:[%s346_s12] sm:$0xff]  ;;  %vm420_vm1 = vcmask 1047640   ;;  %vm464_vm8 = vcmask 64512  }
 0x101   : > { %412 = vrot.lane.b32.xlu0 %v408_v1, %s2177_s5  ;;  %403 = vrot.lane.b32.xlu1 %v401_v2, %s2177_s5  ;;  %v2629_v6 = vand.u32 127, %v430_v5  ;;  %v461_v20 = vld [vmem:[#allocation9] sm:$0xff]  ;;  %v463_v21 = vld [vmem:[#allocation9 + $0x10] sm:$0xff]  ;;  %vm2178_vm12 = vmmov 0   ;;  %v462_v25 = vld [vmem:[#allocation9 + $0x8] sm:$0xff]  ;;  %s2179_s3 = smov 1  }
 0x102   : > { %s2180_s30 = smov 127   ;;  %s2181_s2 = smov 3   ;;  %v1124_v14 = vld [vmem:[#allocation11 + $0x18] sm:$0xff] }
 0x103   : > { %v432_v7 = vadd.s32 128, %v2629_v6  ;;  %v433_v13 = vadd.s32 256, %v2629_v6  ;;  %vm643_vm13 = vcmp.lt.s32.totalorder %v2629_v6, 1  ;;  %vm659_vm14 = vcmp.lt.s32.totalorder %v2629_v6, 127  ;;  %s2182_s21 = smov 6   ;;  %s2183_s16 = smov 2  }
 0x104   : > { %vm857_vm15 = vcmp.lt.s32.totalorder %v2629_v6, 3  ;;  %s2184_s14 = smov 126   ;;  %s2185_s27 = smov 117  }
 0x105   : > { %414 = vrot.lane.b32.xlu0 %v409_v3, %s2177_s5  ;;  %426 = vrot.lane.b32.xlu1 %v424_v4, %s2177_s5  ;;  %s1583_s11 = sshll.u32 %s3019_s18, 8  ;;  %v676_v4 = vld [vmem:[#allocation9 + $0x18] sm:$0xff]  ;;  %s3026_s17 = sld [smem:[#allocation23_spill]] }
 0x106   : > { %s1584_s7 = sadd.s32 4294967285, %s1583_s11  ;;  %s1626_s19 = sshll.u32 %s3019_s18, 1 }
 0x107   : > { %v436_v8 = vstv %s1584_s7  ;;  %s1582_s24 = sshll.u32 %s2610_s10, 5  ;;  %s3027_s29 = sld [smem:[#allocation29_spill]] }
 0x108   : > { %v438_v9 = vadd.s32 %v436_v8, %v432_v7  ;;  %v437_v12 = vadd.s32 %v436_v8, %v2629_v6  ;;  %v439_v17 = vadd.s32 %v436_v8, %v433_v13  ;;  %v677_v7 = vld [vmem:[#allocation9 + $0x20] sm:$0xff]  ;;  %v678_v8 = vld [vmem:[#allocation9 + $0x28] sm:$0xff]  ;;  %s390_s9 = scalar_lea.vmem [#allocation12], %s1582_s24  ;;  %s3028_s11 = sld [smem:[#allocation37_spill]] }
 0x109   : > { %s1395_s13 = sshll.u32 %s390_s9, 4  ;;  %s2834_s13 = int_to_ptr.vmem [resolvable:$true] %s1395_s13 }
 0x10a   : > { %vm441_vm2 = vcmp.ge.s32.totalorder %v438_v9, 0  ;;  %vm444_vm3 = vcmp.lt.s32.totalorder %v438_v9, 1024  ;;  %vm440_vm5 = vcmp.ge.s32.totalorder %v437_v12, 0  ;;  %vm443_vm6 = vcmp.lt.s32.totalorder %v437_v12, 1024 }
 0x10b   : > { %vm2636_vm4 = vmand %vm441_vm2, %vm444_vm3  ;;  %vm442_vm9 = vcmp.ge.s32.totalorder %v439_v17, 0  ;;  %vm445_vm10 = vcmp.lt.s32.totalorder %v439_v17, 1024  ;;  %vm1105_vm2 = vcmp.lt.s32.totalorder %v2629_v6, 126  ;;  %s1627_s22 = sshll.u32 %s3026_s17, 4  ;;  %vm1338_vm3 = vcmask 957440  }
 0x10c   : > { %vm2647_vm7 = vmand %vm440_vm5, %vm443_vm6  ;;  %s1392_s15 = sadd.s32 %s1627_s22, %s1626_s19 }
 0x10d   : > { %vm2657_vm11 = vmand %vm442_vm9, %vm445_vm10  ;;  %s1628_s12 = sshll.u32 %s1392_s15, 7  ;;  %p3029_p7 = scmp.ne.s32.totalorder %s3027_s29, 0 }
 0x10e   : > { %s2839_s7 = scalar_lea.hbm %s3028_s11, %s1628_s12 }
 0x173   : > { %v413_v10 = vpop.permute.xlu0 %412  ;;  %v404_v11 = vpop.permute.xlu1 %403 }
 0x174   : > { %407 = vst.msk [vmem:[#allocation2] sm:$0xff] %vm406_vm0, %v404_v11 }
 0x175   : > { %421 = vst.msk [vmem:[#allocation2] sm:$0xff] %vm420_vm1, %v413_v10 }
 0x177   : > { %v415_v15 = vpop.permute.xlu0 %414  ;;  %v427_v16 = vpop.permute.xlu1 %426 }
 0x178   : > { %v416_v18 = vsel %vm406_vm0, %v413_v10, %v415_v15  ;;  %423 = vst.msk [vmem:[#allocation2 + $0x10] sm:$0xff] %vm406_vm0, %v415_v15  ;;  %vm1079_vm0 = vcmp.lt.s32.totalorder %v2629_v6, 6 }
 0x179   : > { %429 = vst.msk [vmem:[#allocation2 + $0x10] sm:$0xff] %vm420_vm1, %v427_v16  ;;  %1585 = vmatprep.subr.msk.mxu0 %vm2636_vm4, %v416_v18  ;;  %1689 = vmatprep.subr.msk.mxu1 %vm2636_vm4, %v416_v18  ;;  %v459_v41 = vsel %vm2636_vm4, %v416_v18, 0.0  ;;  %vm1092_vm1 = vcmp.lt.s32.totalorder %v2629_v6, 2 }
 0x17c   : > { %v449_v22 = vld [vmem:[#allocation2] sm:$0xff] }
 0x17d   : > { %1586 = vmatpush1.msk.msra.mxu0 %vm2647_vm7, %v449_v22  ;;  %1690 = vmatpush1.msk.msra.mxu1 %vm2647_vm7, %v449_v22  ;;  %v458_v43 = vsel %vm2647_vm7, %v449_v22, 0.0 }
 0x17e   : > { %1587 = vmatmul.mubr.msk.f32.vlgmr.msra.gmra.mrb[0].mxu0 %vm464_vm8, %v461_v20  ;;  %1589 = vmatmul.mubr.msk.f32.vlgmr.msra.gmra.mrb[0].mxu1 %vm464_vm8, %v463_v21 }
 0x17f   : > { %1648 = vmatprep.subr.mxu1 %v2176_v0  ;;  %1650 = vmatprep.mubr.msk.f32.mxu1 %vm2178_vm12, %v2176_v0 }
 0x180   : > { %v451_v24 = vld [vmem:[#allocation2 + $0x10] sm:$0xff]  ;;  %544 = vmatprep.mubr.f32.mxu0 %v2176_v0 }
 0x181   : > { %1649 = vmatpush3.msk.msra.mxu1 %vm2657_vm11, %v451_v24  ;;  %v460_v46 = vsel %vm2657_vm11, %v451_v24, 0.0 }
 0x182   : > { %1651 = vmatmul.mubr.msk.f32.vlgmr.msra.gmra.mrb[2].mxu1 %vm464_vm8, %v461_v20  ;;  %1588 = vmatmul.mubr.msk.f32.gmra.mrb[2].mxu0 %vm464_vm8, %v462_v25 }
 0x183   : > { %1653 = vmatprep.mubr.msk.f32.mxu1 %vm2178_vm12, %v2176_v0  ;;  %1659 = vmatprep.subr.mxu1 %v2176_v0 }
 0x184   : > { %752 = vmatprep.mubr.f32.mxu0 %v2176_v0 }
 0x186   : > { %1654 = vmatmul.mubr.msk.f32.gmra.mrb[4].mxu1 %vm464_vm8, %v462_v25 }
 0x187   : > { %1656 = vmatprep.mubr.msk.f32.mxu1 %vm2178_vm12, %v2176_v0 }
 0x18a   : > { %1657 = vmatmul.mubr.msk.f32.gmra.mrb[6].mxu1 %vm464_vm8, %v463_v21 }
 0x18b   : > { %1661 = vmatprep.mubr.msk.f32.mxu1 %vm2178_vm12, %v2176_v0 }
 0x251   : > { %v540_v26 = vpop.f32.mrb[0].mxu0  ;;  %v552_v27 = vpop.f32.mrb[0].mxu1 }
 0x252   : > { %v554_v28 = vpop.f32.mrb[1].mxu1  ;;  %637 = vrot.lane.b32.xlu0 %v540_v26, %s2179_s3  ;;  %v542_v29 = vpop.f32.mrb[1].mxu0 }
 0x253   : > { %639 = vrot.lane.b32.xlu1 %v542_v29, %s2179_s3 }
 0x255   : > { %v623_v30 = vpop.f32.mrb[2].mxu1  ;;  %v546_v31 = vpop.f32.mrb[2].mxu0 }
 0x256   : > { %641 = vrot.lane.b32.xlu0 %v623_v30, %s2179_s3  ;;  %v1652_v32 = vpop.f32.mrb[3].mxu1  ;;  %v548_v33 = vpop.f32.mrb[3].mxu0 }
 0x257   : > { %655 = vrot.lane.b32.xlu1 %v554_v28, %s2180_s30 }
 0x259   : > { %v628_v34 = vpop.f32.mrb[4].mxu1 }
 0x25a   : > { %v1655_v35 = vpop.f32.mrb[5].mxu1 }
 0x25b   : > { %653 = vrot.lane.b32.xlu1 %v552_v27, %s2180_s30 }
 0x25d   : > { %v633_v36 = vpop.f32.mrb[6].mxu1 }
 0x25e   : > { %657 = vrot.lane.b32.xlu0 %v633_v36, %s2180_s30  ;;  %v1658_v37 = vpop.f32.mrb[7].mxu1 }
 0x2c4   : > { %v638_v38 = vpop.permute.xlu0 %637 }
 0x2c5   : > { %v640_v39 = vpop.permute.xlu1 %639 }
 0x2c6   : > { %v645_v40 = vsel %vm643_vm13, %v638_v38, %v640_v39 }
 0x2c7   : > { %v648_v42 = vadd.f32 %v645_v40, %v459_v41 }
 0x2c8   : > { %v642_v44 = vpop.permute.xlu0 %641 }
 0x2c9   : > { %v651_v45 = vadd.f32 %v648_v42, %v548_v33  ;;  %v644_v47 = vsel %vm643_vm13, %v640_v39, %v642_v44  ;;  %v646_v48 = vsel %vm643_vm13, %v642_v44, %v638_v38  ;;  %v656_v49 = vpop.permute.xlu1 %655 }
 0x2ca   : > { %v647_v50 = vadd.f32 %v646_v48, %v458_v43  ;;  %v649_v51 = vadd.f32 %v644_v47, %v460_v46 }
 0x2cc   : > { %v650_v52 = vadd.f32 %v647_v50, %v546_v31  ;;  %v652_v53 = vadd.f32 %v649_v51, %v628_v34 }
 0x2cd   : > { %v654_v54 = vpop.permute.xlu1 %653 }
 0x2ce   : > { %v661_v55 = vsel %vm659_vm14, %v654_v54, %v656_v49 }
 0x2cf   : > { %v663_v56 = vadd.f32 %v661_v55, %v650_v52 }
 0x2d0   : > { %v658_v57 = vpop.permute.xlu0 %657 }
 0x2d1   : > { %v660_v58 = vsel %vm659_vm14, %v656_v49, %v658_v57  ;;  %v662_v59 = vsel %vm659_vm14, %v658_v57, %v654_v54  ;;  %v666_v62 = vmul.f32 0.2, %v663_v56 }
 0x2d2   : > { %v664_v60 = vadd.f32 %v660_v58, %v651_v45  ;;  %v665_v61 = vadd.f32 %v662_v59, %v652_v53 }
 0x2d3   : > { %v669_v5 = vmax.f32 %v663_v56, %v666_v62  ;;  %v900_v62 = vld [vmem:[#allocation9 + $0x40] sm:$0xff] }
 0x2d4   : > { %v667_v63 = vmul.f32 0.2, %v664_v60  ;;  %v668_v1 = vmul.f32 0.2, %v665_v61 }
 0x2d5   : > { %v672_v38 = vsel %vm2647_vm7, %v669_v5, 0.0 }
 0x2d6   : > { %v670_v2 = vmax.f32 %v664_v60, %v667_v63  ;;  %v671_v3 = vmax.f32 %v665_v61, %v668_v1  ;;  %v898_v60 = vld [vmem:[#allocation9 + $0x30] sm:$0xff]  ;;  %v899_v61 = vld [vmem:[#allocation9 + $0x38] sm:$0xff] }
 0x2d8   : > { %1594 = vmatprep.subr.msk.mxu0 %vm2636_vm4, %v670_v2  ;;  %1660 = vmatpush3.msk.msra.mxu1 %vm2657_vm11, %v671_v3  ;;  %v673_v32 = vsel %vm2636_vm4, %v670_v2, 0.0  ;;  %v674_v37 = vsel %vm2657_vm11, %v671_v3, 0.0 }
 0x2d9   : > { %1595 = vmatpush1.msk.msra.mxu0 %vm2647_vm7, %v669_v5  ;;  %1662 = vmatmul.mubr.msk.f32.vlgmr.msra.gmra.mrb[8].mxu1 %vm464_vm8, %v676_v4 }
 0x2da   : > { %1596 = vmatmul.mubr.msk.f32.vlgmr.msra.gmra.mrb[4].mxu0 %vm464_vm8, %v676_v4  ;;  %1664 = vmatprep.mubr.msk.f32.mxu1 %vm2178_vm12, %v2176_v0 }
 0x2db   : > { %758 = vmatprep.mubr.f32.mxu0 %v2176_v0  ;;  %1670 = vmatprep.subr.mxu1 %v2176_v0 }
 0x2dd   : > { %1665 = vmatmul.mubr.msk.f32.gmra.mrb[10].mxu1 %vm464_vm8, %v677_v7 }
 0x2de   : > { %1597 = vmatmul.mubr.msk.f32.gmra.mrb[6].mxu0 %vm464_vm8, %v677_v7  ;;  %1667 = vmatprep.mubr.msk.f32.mxu1 %vm2178_vm12, %v2176_v0 }
 0x2df   : > { %764 = vmatprep.mubr.f32.mxu0 %v2176_v0 }
 0x2e1   : > { %1668 = vmatmul.mubr.msk.f32.gmra.mrb[12].mxu1 %vm464_vm8, %v678_v8 }
 0x2e2   : > { %1598 = vmatmul.mubr.msk.f32.gmra.mrb[8].mxu0 %vm464_vm8, %v678_v8  ;;  %1672 = vmatprep.mubr.msk.f32.mxu1 %vm2178_vm12, %v2176_v0 }
 0x2e3   : > { %974 = vmatprep.mubr.f32.mxu0 %v2176_v0 }
 0x3ac   : > { %v837_v9 = vpop.f32.mrb[8].mxu1 }
 0x3ad   : > { %855 = vrot.lane.b32.xlu0 %v837_v9, %s2181_s2  ;;  %v754_v10 = vpop.f32.mrb[4].mxu0  ;;  %v1663_v11 = vpop.f32.mrb[9].mxu1 }
 0x3ae   : > { %v756_v12 = vpop.f32.mrb[5].mxu0 }
 0x3af   : > { %853 = vrot.lane.b32.xlu1 %v756_v12, %s2181_s2 }
 0x3b0   : > { %v842_v13 = vpop.f32.mrb[10].mxu1 }
 0x3b1   : > { %851 = vrot.lane.b32.xlu0 %v754_v10, %s2181_s2  ;;  %v760_v15 = vpop.f32.mrb[6].mxu0  ;;  %v1666_v16 = vpop.f32.mrb[11].mxu1  ;;  %s2186_s2 = smov [#allocation12]  }
 0x3b2   : > { %v762_v17 = vpop.f32.mrb[7].mxu0 }
 0x3b3   : > { %868 = vrot.lane.b32.xlu1 %v842_v13, %s2179_s3  ;;  %v1121_v13 = vld [vmem:[#allocation11] sm:$0xff] }
 0x3b4   : > { %v847_v18 = vpop.f32.mrb[12].mxu1 }
 0x3b5   : > { %866 = vrot.lane.b32.xlu0 %v762_v17, %s2179_s3  ;;  %v766_v20 = vpop.f32.mrb[8].mxu0  ;;  %v1669_v21 = vpop.f32.mrb[13].mxu1 }
 0x3b6   : > { %v768_v22 = vpop.f32.mrb[9].mxu0 }
 0x3b7   : > { %864 = vrot.lane.b32.xlu1 %v760_v15, %s2179_s3 }
 0x3b9   : > { %878 = vrot.lane.b32.xlu0 %v768_v22, %s2180_s30 }
 0x3bb   : > { %880 = vrot.lane.b32.xlu1 %v847_v18, %s2180_s30 }
 0x3bd   : > { %876 = vrot.lane.b32.xlu0 %v766_v20, %s2180_s30 }
 0x41f   : > { %v856_v24 = vpop.permute.xlu0 %855 }
 0x421   : > { %v854_v25 = vpop.permute.xlu1 %853 }
 0x422   : > { %v858_v31 = vsel %vm857_vm15, %v854_v25, %v856_v24 }
 0x423   : > { %v852_v26 = vpop.permute.xlu0 %851  ;;  %v863_v41 = vadd.f32 %v858_v31, %v674_v37 }
 0x424   : > { %v859_v29 = vsel %vm857_vm15, %v852_v26, %v854_v25  ;;  %v860_v33 = vsel %vm857_vm15, %v856_v24, %v852_v26 }
 0x425   : > { %v869_v27 = vpop.permute.xlu1 %868  ;;  %v862_v35 = vadd.f32 %v859_v29, %v673_v32  ;;  %v861_v42 = vadd.f32 %v860_v33, %v672_v38 }
 0x427   : > { %v867_v28 = vpop.permute.xlu0 %866 }
 0x428   : > { %v870_v39 = vsel %vm643_vm13, %v867_v28, %v869_v27 }
 0x429   : > { %v865_v30 = vpop.permute.xlu1 %864  ;;  %v875_v46 = vadd.f32 %v870_v39, %v863_v41 }
 0x42a   : > { %v871_v34 = vsel %vm643_vm13, %v865_v30, %v867_v28  ;;  %v872_v40 = vsel %vm643_vm13, %v869_v27, %v865_v30 }
 0x42b   : > { %v879_v36 = vpop.permute.xlu0 %878  ;;  %v874_v43 = vadd.f32 %v871_v34, %v862_v35  ;;  %v873_v47 = vadd.f32 %v872_v40, %v861_v42 }
 0x42d   : > { %v881_v44 = vpop.permute.xlu1 %880 }
 0x42e   : > { %v882_v45 = vsel %vm659_vm14, %v879_v36, %v881_v44 }
 0x42f   : > { %v886_v48 = vadd.f32 %v882_v45, %v874_v43  ;;  %v877_v49 = vpop.permute.xlu0 %876 }
 0x430   : > { %v883_v50 = vsel %vm659_vm14, %v877_v49, %v879_v36  ;;  %v884_v51 = vsel %vm659_vm14, %v881_v44, %v877_v49 }
 0x431   : > { %v889_v52 = vmul.f32 0.2, %v886_v48  ;;  %v885_v53 = vadd.f32 %v883_v50, %v873_v47  ;;  %v887_v54 = vadd.f32 %v884_v51, %v875_v46 }
 0x433   : > { %v892_v55 = vmax.f32 %v886_v48, %v889_v52  ;;  %v888_v56 = vmul.f32 0.2, %v885_v53  ;;  %v890_v57 = vmul.f32 0.2, %v887_v54 }
 0x435   : > { %v2752_v58 = vmax.f32 %v885_v53, %v888_v56  ;;  %v2754_v59 = vmax.f32 %v887_v54, %v890_v57  ;;  %1603 = vmatprep.subr.msk.mxu0 %vm2636_vm4, %v892_v55  ;;  %v895_v24 = vsel %vm2636_vm4, %v892_v55, 0.0  ;;  %v1122_v53 = vld [vmem:[#allocation11 + $0x8] sm:$0xff]  ;;  %v1123_v54 = vld [vmem:[#allocation11 + $0x10] sm:$0xff] }
 0x437   : > { %1604 = vmatpush1.msk.msra.mxu0 %vm2647_vm7, %v2752_v58  ;;  %1671 = vmatpush3.msk.msra.mxu1 %vm2657_vm11, %v2754_v59  ;;  %v896_v29 = vsel %vm2657_vm11, %v2754_v59, 0.0  ;;  %v894_v31 = vsel %vm2647_vm7, %v2752_v58, 0.0 }
 0x438   : > { %1605 = vmatmul.mubr.msk.f32.vlgmr.msra.gmra.mrb[10].mxu0 %vm464_vm8, %v898_v60  ;;  %1673 = vmatmul.mubr.msk.f32.vlgmr.msra.gmra.mrb[14].mxu1 %vm464_vm8, %v898_v60 }
 0x439   : > { %1675 = vmatprep.mubr.msk.f32.mxu1 %vm2178_vm12, %v2176_v0  ;;  %980 = vmatprep.mubr.f32.mxu0 %v2176_v0 }
 0x43c   : > { %1676 = vmatmul.mubr.msk.f32.gmra.mrb[16].mxu1 %vm464_vm8, %v899_v61  ;;  %1606 = vmatmul.mubr.msk.f32.gmra.mrb[12].mxu0 %vm464_vm8, %v899_v61 }
 0x43d   : > { %986 = vmatprep.mubr.f32.mxu0 %v2176_v0  ;;  %1678 = vmatprep.mubr.msk.f32.mxu1 %vm2178_vm12, %v2176_v0 }
 0x440   : > { %1607 = vmatmul.mubr.msk.f32.gmra.mrb[14].mxu0 %vm464_vm8, %v900_v62  ;;  %1679 = vmatmul.mubr.msk.f32.gmra.mrb[18].mxu1 %vm464_vm8, %v900_v62 }
 0x441   : > { %1201 = vmatprep.mubr.f32.mxu0 %v2176_v0  ;;  %1683 = vmatprep.mubr.msk.f32.mxu1 %vm464_vm8, %v1121_v13 }
 0x50b   : > { %v976_v63 = vpop.f32.mrb[10].mxu0  ;;  %v1059_v1 = vpop.f32.mrb[14].mxu1 }
 0x50c   : > { %1077 = vrot.lane.b32.xlu1 %v1059_v1, %s2182_s21  ;;  %v978_v2 = vpop.f32.mrb[11].mxu0  ;;  %v1674_v3 = vpop.f32.mrb[15].mxu1 }
 0x50d   : > { %1075 = vrot.lane.b32.xlu0 %v978_v2, %s2182_s21 }
 0x50f   : > { %v1064_v4 = vpop.f32.mrb[16].mxu1  ;;  %v982_v5 = vpop.f32.mrb[12].mxu0 }
 0x510   : > { %1073 = vrot.lane.b32.xlu1 %v976_v63, %s2182_s21  ;;  %v984_v7 = vpop.f32.mrb[13].mxu0  ;;  %v1677_v8 = vpop.f32.mrb[17].mxu1  ;;  %s2013_s21 = sshll.u32 %s2186_s2, 4  ;;  %s2014_s21 = int_to_ptr.vmem [resolvable:$false] %s2013_s21 }
 0x511   : > { %1090 = vrot.lane.b32.xlu0 %v1064_v4, %s2183_s16  ;;  %p2016_p11 = scmp.lt.s32.totalorder %s2834_s13, %s2014_s21 }
 0x513   : > { %v988_v9 = vpop.f32.mrb[14].mxu0  ;;  %v1069_v10 = vpop.f32.mrb[18].mxu1 }
 0x514   : > { %1088 = vrot.lane.b32.xlu1 %v984_v7, %s2183_s16  ;;  %v990_v11 = vpop.f32.mrb[15].mxu0  ;;  %v1680_v12 = vpop.f32.mrb[19].mxu1 }
 0x515   : > { %1086 = vrot.lane.b32.xlu0 %v982_v5, %s2183_s16  ;;  %s2015_s16 = scalar_lea.vmem %s2014_s21, 1024 }
 0x518   : > { %1101 = vrot.lane.b32.xlu1 %v990_v11, %s2184_s14 }
 0x519   : > { %1103 = vrot.lane.b32.xlu0 %v1069_v10, %s2184_s14 }
 0x51c   : > { %1099 = vrot.lane.b32.xlu1 %v988_v9, %s2184_s14 }
 0x57e   : > { %v1078_v15 = vpop.permute.xlu1 %1077 }
 0x57f   : > { %v1076_v16 = vpop.permute.xlu0 %1075 }
 0x580   : > { %v1080_v26 = vsel %vm1079_vm0, %v1076_v16, %v1078_v15 }
 0x581   : > { %v1085_v36 = vadd.f32 %v1080_v26, %v896_v29 }
 0x582   : > { %v1074_v17 = vpop.permute.xlu1 %1073 }
 0x583   : > { %v1091_v18 = vpop.permute.xlu0 %1090  ;;  %v1081_v20 = vsel %vm1079_vm0, %v1074_v17, %v1076_v16  ;;  %v1082_v27 = vsel %vm1079_vm0, %v1078_v15, %v1074_v17 }
 0x584   : > { %v1084_v28 = vadd.f32 %v1081_v20, %v895_v24  ;;  %v1083_v37 = vadd.f32 %v1082_v27, %v894_v31 }
 0x586   : > { %v1089_v21 = vpop.permute.xlu1 %1088 }
 0x587   : > { %v1087_v22 = vpop.permute.xlu0 %1086  ;;  %v1093_v32 = vsel %vm1092_vm1, %v1089_v21, %v1091_v18 }
 0x588   : > { %v1094_v25 = vsel %vm1092_vm1, %v1087_v22, %v1089_v21  ;;  %v1095_v33 = vsel %vm1092_vm1, %v1091_v18, %v1087_v22  ;;  %v1098_v40 = vadd.f32 %v1093_v32, %v1085_v36 }
 0x589   : > { %v1097_v34 = vadd.f32 %v1094_v25, %v1084_v28  ;;  %v1096_v41 = vadd.f32 %v1095_v33, %v1083_v37 }
 0x58a   : > { %v1102_v30 = vpop.permute.xlu1 %1101 }
 0x58b   : > { %v1104_v35 = vpop.permute.xlu0 %1103 }
 0x58c   : > { %v1106_v38 = vsel %vm1105_vm2, %v1102_v30, %v1104_v35 }
 0x58d   : > { %v1110_v39 = vadd.f32 %v1106_v38, %v1097_v34 }
 0x58e   : > { %v1100_v42 = vpop.permute.xlu1 %1099 }
 0x58f   : > { %v1113_v43 = vmul.f32 0.2, %v1110_v39  ;;  %v1107_v44 = vsel %vm1105_vm2, %v1100_v42, %v1102_v30  ;;  %v1108_v45 = vsel %vm1105_vm2, %v1104_v35, %v1100_v42 }
 0x590   : > { %v1109_v46 = vadd.f32 %v1107_v44, %v1096_v41  ;;  %v1111_v47 = vadd.f32 %v1108_v45, %v1098_v40 }
 0x591   : > { %v1116_v48 = vmax.f32 %v1110_v39, %v1113_v43 }
 0x592   : > { %v1112_v49 = vmul.f32 0.2, %v1109_v46  ;;  %v1114_v50 = vmul.f32 0.2, %v1111_v47 }
 0x593   : > { %1612 = vmatprep.subr.msk.mxu0 %vm2636_vm4, %v1116_v48 }
 0x594   : > { %v1115_v51 = vmax.f32 %v1109_v46, %v1112_v49  ;;  %v1117_v52 = vmax.f32 %v1111_v47, %v1114_v50 }
 0x596   : > { %1613 = vmatpush1.msk.msra.mxu0 %vm2647_vm7, %v1115_v51  ;;  %1681 = vmatprep.subr.msk.mxu1 %vm2657_vm11, %v1117_v52 }
 0x597   : > { %1614 = vmatmul.mubr.msk.f32.vlgmr.msra.gmra.mrb[16].mxu0 %vm464_vm8, %v1121_v13  ;;  %1682 = vmatpush3.msk.msra.mxu1 %vm2657_vm11, %v1117_v52 }
 0x598   : > { %1207 = vmatprep.mubr.f32.mxu0 %v2176_v0  ;;  %1684 = vmatmul.mubr.msk.f32.vlgmr.msra.gmra.mrb[20].mxu1 %vm464_vm8, %v1122_v53 }
 0x599   : > { %1686 = vmatprep.mubr.msk.f32.mxu1 %vm464_vm8, %v1123_v54 }
 0x59b   : > { %1615 = vmatmul.mubr.msk.f32.gmra.mrb[18].mxu0 %vm464_vm8, %v1122_v53 }
 0x59c   : > { %1213 = vmatprep.mubr.f32.mxu0 %v2176_v0  ;;  %1687 = vmatmul.mubr.msk.f32.gmra.mrb[22].mxu1 %vm464_vm8, %v1124_v14 }
 0x59f   : > { %1616 = vmatmul.mubr.msk.f32.gmra.mrb[20].mxu0 %vm464_vm8, %v1123_v54 }
 0x5a0   : > { %1219 = vmatprep.mubr.f32.mxu0 %v2176_v0 }
 0x5a3   : > { %1617 = vmatmul.mubr.msk.f32.gmra.mrb[22].mxu0 %vm464_vm8, %v1124_v14 }
 0x66a   : > { %v1203_v19 = vpop.f32.mrb[16].mxu0 }
 0x66b   : > { %v1685_v23 = vpop.f32.mrb[20].mxu1  ;;  %v1205_v55 = vpop.f32.mrb[17].mxu0  ;;  %1345 = vrot.lane.b32.xlu1 %v1203_v19, %s2180_s30 }
 0x66c   : > { %v1292_v56 = vpop.f32.mrb[21].mxu1 }
 0x66e   : > { %v1209_v57 = vpop.f32.mrb[18].mxu0 }
 0x66f   : > { %v1688_v58 = vpop.f32.mrb[22].mxu1  ;;  %v1211_v59 = vpop.f32.mrb[19].mxu0 }
 0x670   : > { %1315 = vrot.lane.b32.xlu0 %v1688_v58, %s2179_s3  ;;  %v1302_v60 = vpop.f32.mrb[23].mxu1 }
 0x672   : > { %v1215_v61 = vpop.f32.mrb[20].mxu0 }
 0x673   : > { %v1217_v62 = vpop.f32.mrb[21].mxu0 }
 0x676   : > { %v1221_v63 = vpop.f32.mrb[22].mxu0 }
 0x677   : > { %1311 = vrot.lane.b32.xlu0 %v1221_v63, %s2179_s3  ;;  %v1223_v0 = vpop.f32.mrb[23].mxu0 }
 0x678   : > { %1313 = vrot.lane.b32.xlu1 %v1223_v0, %s2179_s3  ;;  %s1380_s3 = scalar_lea.sflag [#allocation5], %s2610_s10 }
 0x67b   : > { %1347 = vrot.lane.b32.xlu0 %v1205_v55, %s2180_s30 }
 0x67c   : > { %1349 = vrot.lane.b32.xlu1 %v1292_v56, %s2180_s30  ;;  %s2009_s30 = scalar_lea.vmem %s2834_s13, 512 }
 0x67d   : > { %p2010_p2 = scmp.ne.s32.totalorder %s2834_s13, %s2009_s30  ;;  %p2017_p9 = scmp.lt.s32.totalorder %s2015_s16, %s2009_s30 }
 0x67f   : > { %p2011_p10 = pnand %p2010_p2, %p3029_p7  ;;  %p2018_p0 = por %p2017_p9, %p2016_p11 }
 0x681   : > { %p2012_p3 = pneg %p2011_p10 }
 0x683   : > { %p2019_p5 = pnand %p2018_p0, %p2012_p3 }
 0x6dd   : > { %v1346_v2 = vpop.permute.xlu1 %1345 }
 0x6e2   : > { %v1316_v1 = vpop.permute.xlu0 %1315 }
 0x6e9   : > { %v1312_v3 = vpop.permute.xlu0 %1311 }
 0x6ea   : > { %v1319_v4 = vsel %vm643_vm13, %v1316_v1, %v1312_v3  ;;  %v1314_v5 = vpop.permute.xlu1 %1313 }
 0x6eb   : > { %v1320_v7 = vadd.f32 %v1319_v4, %v1209_v57  ;;  %v1317_v8 = vsel %vm643_vm13, %v1314_v5, %v1316_v1  ;;  %v1318_v9 = vsel %vm643_vm13, %v1312_v3, %v1314_v5 }
 0x6ec   : > { %v1322_v10 = vadd.f32 %v1685_v23, %v1317_v8  ;;  %v1321_v13 = vadd.f32 %v1318_v9, %v1211_v59 }
 0x6ed   : > { %v1323_v11 = vmul.f32 0.2, %v1320_v7  ;;  %v1348_v12 = vpop.permute.xlu0 %1347 }
 0x6ee   : > { %v1352_v15 = vsel %vm659_vm14, %v1346_v2, %v1348_v12  ;;  %v1350_v16 = vpop.permute.xlu1 %1349  ;;  %v1325_v17 = vmul.f32 0.2, %v1322_v10  ;;  %v1324_v26 = vmul.f32 0.2, %v1321_v13 }
 0x6ef   : > { %v1354_v18 = vadd.f32 %v1352_v15, %v1215_v61  ;;  %v1351_v20 = vsel %vm659_vm14, %v1348_v12, %v1350_v16  ;;  %v1326_v21 = vmax.f32 %v1320_v7, %v1323_v11  ;;  %v1353_v22 = vsel %vm659_vm14, %v1350_v16, %v1346_v2 }
 0x6f0   : > { %v1355_v24 = vadd.f32 %v1351_v20, %v1217_v62  ;;  %v1356_v27 = vadd.f32 %v1353_v22, %v1302_v60  ;;  %v1328_v30 = vmax.f32 %v1322_v10, %v1325_v17  ;;  %v1327_v32 = vmax.f32 %v1321_v13, %v1324_v26 }
 0x6f1   : > { %v1357_v25 = vmul.f32 0.2, %v1354_v18  ;;  %1332 = vrot.lane.b32.xlu0 %v1326_v21, %s2185_s27 }
 0x6f2   : > { %v1358_v28 = vmul.f32 0.2, %v1355_v24  ;;  %v1359_v31 = vmul.f32 0.2, %v1356_v27 }
 0x6f3   : > { %v1360_v29 = vmax.f32 %v1354_v18, %v1357_v25 }
 0x6f4   : > { %v1361_v33 = vmax.f32 %v1355_v24, %v1358_v28  ;;  %v1362_v6 = vmax.f32 %v1356_v27, %v1359_v31 }
 0x6f5   : > { %1366 = vrot.lane.b32.xlu1 %v1360_v29, %s2185_s27  ;;  %1336 = vrot.lane.b32.xlu0 %v1328_v30, %s2185_s27 }
 0x6f9   : > { %1334 = vrot.lane.b32.xlu1 %v1327_v32, %s2185_s27  ;;  %1368 = vrot.lane.b32.xlu0 %v1361_v33, %s2185_s27 }
 0x6fd   : > { %1370 = vrot.lane.b32.xlu1 %v1362_v6, %s2185_s27 }
 0x763   : > { %v1333_v34 = vpop.permute.xlu0 %1332 }
 0x767   : > { %v1337_v35 = vpop.permute.xlu0 %1336  ;;  %v1367_v36 = vpop.permute.xlu1 %1366 }
 0x76b   : > { %v1369_v37 = vpop.permute.xlu0 %1368  ;;  %v1335_v38 = vpop.permute.xlu1 %1334 }
 0x76c   : > { %v1372_v39 = vsel %vm1338_vm3, %v1367_v36, %v1369_v37  ;;  %v1339_v40 = vsel %vm1338_vm3, %v1333_v34, %v1335_v38  ;;  %v1340_v41 = vsel %vm1338_vm3, %v1335_v38, %v1337_v35 }
 0x76d   : > { %1623 = vst [vmem:[%s390_s9 + $0x10] sm:$0xff] %v1372_v39  ;;  %1343 = vst [vmem:[%s390_s9] sm:$0xff] %v1339_v40 }
 0x76e   : > { %1344 = vst [vmem:[%s390_s9 + $0x8] sm:$0xff] %v1340_v41 }
 0x76f   : > { %v1371_v42 = vpop.permute.xlu1 %1370 }
 0x770   : > { %v1373_v43 = vsel %vm1338_vm3, %v1369_v37, %v1371_v42 }
 0x771   : > { %1624 = vst [vmem:[%s390_s9 + $0x18] sm:$0xff] %v1373_v43 }
 0x772   : > { %2022 = shalt.err (!%p2019_p5)
}
 0x773   : > { %s2023_s14 = scalar_lea.hbm %s2839_s7, 512  ;;  %s2027_s19 = scalar_lea.hbm %s3028_s11, 4096 }
 0x774   : > { %p2024_p12 = scmp.ne.s32.totalorder %s2839_s7, %s2023_s14  ;;  %p2028_p4 = scmp.lt.u32.totalorder %s2839_s7, %s3028_s11 }
 0x775   : > { %p2029_p1 = scmp.lt.u32.totalorder %s2027_s19, %s2023_s14  ;;  %p2031_p2 = scmp.lt.u32.totalorder %s2023_s14, %s2839_s7 }
 0x776   : > { %p2025_p6 = pnand %p2024_p12, %p3029_p7 }
 0x777   : > { %p2030_p13 = por %p2029_p1, %p2028_p4 }
 0x778   : > { %p2026_p8 = pneg %p2025_p6 }
 0x779   : > { %p2032_p10 = por %p2031_p2, %p2030_p13 }
 0x77b   : > { %p2033_p3 = pnand %p2032_p10, %p2026_p8 }
 0x77d   : > { %2036 = shalt.err (!%p2033_p3)
}
 0x77e   : > { %s2187_s15 = smov 256   ;;  %s2188_s9 = smov 1024  }
 0x77f   : > { %s2189_s12 = smov 16  }
 0x780   : > { %1705 = dma.vmem_to_hbm [thread:$0]  (%p3029_p7), %s2834_s13, 512, %s2839_s7, %s1380_s3, %s2187_s15, %s2188_s9, %s2189_s12  }
 0x781 PF: > { %s3030_s18 = sld [smem:[#allocation20_spill]]  ;;  %s3031_s5 = sld [smem:[#allocation30_spill]] }
 0x782   : > { %p1733_p11 = scmp.ge.s32.totalorder %s2167_s6, 2 }
 0x787   : > { %s1410_s30 = sand.u32 1, %s3030_s18   ;;  %p3032_p9 = scmp.ne.s32.totalorder %s3031_s5, 0 }
 0x788   : > { %s1411_s2 = scalar_lea.sflag [#allocation5], %s1410_s30 }
 0x789   : > { %p1725_p0 = pnand %p1733_p11, %p3032_p9 }
 0x78b   : > { %2110 = dma.done.wait (!%p1725_p0), %s1411_s2, 512  }
 0x78c   : > { %2112 = vsyncadd (!%p1725_p0), %s1411_s2, 4294966784  ;;  %s25_s6 = sadd.s32 1, %s2167_s6   ;;  %s3034_s18 = sld [smem:[#allocation19_spill]] }
 0x78d   : > { %p2870_p5 = scmp.ge.s32.totalorder %s25_s6, 10   ;;  %s3035_s10 = sld [smem:[#allocation21_spill]] }
 0x78e   : > { %s3036_s27 = sld [smem:[#allocation24_spill]]  ;;  %s3037_s13 = sld [smem:[#allocation25_spill]] }
 0x78f   : > { %s3038_s29 = sld [smem:[#allocation27_spill]]  ;;  %s3039_s30 = sld [smem:[#allocation31_spill]] }
 0x790   : > { %s3041_s19 = smov %s2123_s20  ;;  %s3042_s20 = smov %s2566_s28 }
 0x791   : > { %s3044_s22 = smov %s2135_s23  ;;  %s3045_s23 = smov %s2494_s8 }
 0x792   : > { %s3046_s24 = smov %s2143_s25  ;;  %s3047_s25 = smov %s2147_s26 }
 0x793   : > { %s3043_s21 = smov %s3035_s10  ;;  %s3048_s26 = smov %s2497_s1 }
 0x794   : > { %s3049_s28 = smov %s3037_s13  ;;  %24 = sbr.rel (!%p2870_p5) target bundleno = 19 (0x13), region = 120 }
 0x79b   :  { %1416 = vsyncpa [#allocation4], 1 }
 0x79c   :  { %1418 = vsyncpa [#allocation4 + $0x1], 1 }
 0x79d   :  { %1419 = vsyncpa [#allocation7], 1 }
 0x79e   :  { %1421 = vsyncpa [#allocation7 + $0x1], 1 }
 0x79f   :  { %1422 = vsyncpa [#allocation10], 1 }
 0x7a0   :  { %1423 = vsyncpa [#allocation5], 1 }
 0x7a1   :  { %1425 = vsyncpa [#allocation5 + $0x1], 1 }

</bundles_post_ra>
